<compile_context>
chip_gen: v6e
topology: v6e:2x2x1
jax: 0.10.0
libtpu: 0.0.40
codegen_flags: <defaults>
</compile_context>

<pallas_src>
import jax
import jax.numpy as jnp
from jax.experimental import pallas as pl
from jax.experimental.pallas import tpu as pltpu

# ------------------------- static configuration -------------------------
BATCH        = 4
BPAD         = 8           # batch padded to one sublane tile
SEQ_LEN      = 10          # seq_length = 10 per docstring
NUM_KEYS     = 6           # len(data_keys) == Conv1d in_channels
OUT_CHANNELS = 32          # conv out_channels == LSTM input_size
KERNEL_SIZE  = 3
STRIDE       = 1           # kernel written for stride=1
L_OUT        = (SEQ_LEN - KERNEL_SIZE) // STRIDE + 1
HIDDEN       = 32          # lstm_hidden_dim
NUM_LAYERS   = 2           # lstm_num_layers
NUM_CLASSES  = 2
MLP_HIDDEN   = (64, 32)    # mlp_hidden_dims (kernel assumes exactly 2 hidden layers)
SLIP_OUT     = 8           # 2 * 4
LEAKY_SLOPE  = 0.01
BN_EPS       = 1e-5

LANES   = 128
M1, M2  = MLP_HIDDEN
KC      = KERNEL_SIZE * NUM_KEYS       # 18 im2col columns
KC_PAD  = 24                           # padded to a multiple of 8

assert OUT_CHANNELS == HIDDEN, "uniform stacked-LSTM input dims assumed"
assert NUM_LAYERS == 2, "kernel written for 2 LSTM layers"
assert 4 * HIDDEN == LANES and 2 * M1 == LANES
assert NUM_CLASSES + SLIP_OUT <= LANES

# ---- static row offsets inside the single packed parameter block (all 8-aligned) ----
ROW_W0    = 0            # (KC_PAD, 128)  conv folded into layer-0 input projection
ROW_WHH0  = 24           # (32, 128)      layer-0 recurrent weight
ROW_WIH1  = 56           # (32, 128)      layer-1 input projection
ROW_WHH1  = 88           # (32, 128)      layer-1 recurrent weight
ROW_BIAS  = 120          # 8 rows: b0, b1, [rb1|sb1], rb2, sb2, rb3, sb3, unused
ROW_WH1   = 128          # (32, 128)      fused head-1 weight [rw1 | sw1a]  (BN folded)
ROW_SW1B  = 160          # (8, 128)       rows 0..1 = onehot->slip1 weight, lanes 0..63
ROW_RW2   = 168          # (64, 128)      road layer-2 weight, lanes 0..31  (BN folded)
ROW_SW2   = 232          # (64, 128)      slip layer-2 weight, lanes 0..31  (BN folded)
ROW_RW3   = 296          # (32, 128)      road output weight, lanes 0..1
ROW_SW3   = 328          # (32, 128)      slip output weight, lanes 0..7
P_ROWS    = 360

VSPEC = pl.BlockSpec(memory_space=pltpu.MemorySpace.VMEM)  # whole-array VMEM block, no grid


# ------------------------- fused Pallas kernel -------------------------
def sruprs_kernel(x_ref,      # (L_OUT*BPAD, KC_PAD) im2col input, rows t-major (row = t*8 + b)
                  p_ref,      # (P_ROWS, 128) packed parameter block
                  out_ref):   # (BPAD, 128): [road(2) | mu(4) | std(4) | zeros]
    P = p_ref

    def lrelu(v):
        return jnp.where(v >= 0.0, v, LEAKY_SLOPE * v)

    def lstm_layer(xW, whh):
        # xW: (L_OUT*BPAD, 4H) hoisted input projection incl. biases; whh: (H, 4H)
        h = jnp.zeros((BPAD, HIDDEN), jnp.float32)
        c = jnp.zeros((BPAD, HIDDEN), jnp.float32)
        hs = []
        for t in range(L_OUT):
            gates = xW[t * BPAD:(t + 1) * BPAD, :] + jnp.dot(
                h, whh, preferred_element_type=jnp.float32)          # (8, 128) aligned tile
            sig = jax.nn.sigmoid(gates)                               # one full-width EUP pass
            tnh = jnp.tanh(gates)                                     # one full-width EUP pass
            i = sig[:, 0 * HIDDEN:1 * HIDDEN]
            f = sig[:, 1 * HIDDEN:2 * HIDDEN]
            g = tnh[:, 2 * HIDDEN:3 * HIDDEN]
            o = sig[:, 3 * HIDDEN:4 * HIDDEN]
            c = f * c + i * g
            h = o * jnp.tanh(c)
            hs.append(h)
        return h, hs

    # ---- LSTM layer 0: conv folded into the hoisted input projection (ONE matmul) ----
    xW0 = (jnp.dot(x_ref[...], P[ROW_W0:ROW_W0 + KC_PAD, :],
                   preferred_element_type=jnp.float32)
           + P[ROW_BIAS + 0:ROW_BIAS + 1, :])                        # (L_OUT*BPAD, 4H)
    _, hs0 = lstm_layer(xW0, P[ROW_WHH0:ROW_WHH0 + HIDDEN, :])
    seq0 = jnp.concatenate(hs0, axis=0)                              # (L_OUT*BPAD, H), t-major

    # ---- LSTM layer 1: hoisted input projection over the whole sequence ----
    xW1 = (jnp.dot(seq0, P[ROW_WIH1:ROW_WIH1 + HIDDEN, :],
                   preferred_element_type=jnp.float32)
           + P[ROW_BIAS + 1:ROW_BIAS + 2, :])                        # (L_OUT*BPAD, 4H)
    enc, _ = lstm_layer(xW1, P[ROW_WHH1:ROW_WHH1 + HIDDEN, :])       # (BPAD, HIDDEN)

    # ---- fused first layer of both heads: enc @ [rw1 | sw1a] + [rb1 | sb1] ----
    head1 = (jnp.dot(enc, P[ROW_WH1:ROW_WH1 + HIDDEN, :],
                     preferred_element_type=jnp.float32)
             + P[ROW_BIAS + 2:ROW_BIAS + 3, :])                      # (BPAD, 128)
    h1_road = lrelu(head1[:, 0:M1])                                  # (BPAD, 64)
    s1_enc = head1[:, M1:2 * M1]                                     # slip pre-act (enc part + bias)

    # ---- road branch -> softmax (exact normalization) ----
    h2_road = lrelu(jnp.dot(h1_road, P[ROW_RW2:ROW_RW2 + M1, 0:M2],
                            preferred_element_type=jnp.float32)
                    + P[ROW_BIAS + 3:ROW_BIAS + 4, 0:M2])
    logits = (jnp.dot(h2_road, P[ROW_RW3:ROW_RW3 + M2, 0:NUM_CLASSES],
                      preferred_element_type=jnp.float32)
              + P[ROW_BIAS + 5:ROW_BIAS + 6, 0:NUM_CLASSES])         # (BPAD, 2)
    z = logits - jnp.max(logits, axis=-1, keepdims=True)
    e = jnp.exp(z)
    probs = e / jnp.sum(e, axis=-1, keepdims=True)

    # ---- label_to_onehot: one-hot of argmax (first index wins ties; argmax(probs)==argmax(logits))
    col = jax.lax.broadcasted_iota(jnp.int32, (BPAD, NUM_CLASSES), 1)
    is_max = logits >= jnp.max(logits, axis=-1, keepdims=True)
    idx = jnp.min(jnp.where(is_max, col, NUM_CLASSES), axis=-1, keepdims=True)
    onehot = (col == idx).astype(jnp.float32)

    # ---- slip branch on concat([enc, onehot]) via pre-split weight ----
    s1 = s1_enc + jnp.dot(onehot, P[ROW_SW1B:ROW_SW1B + NUM_CLASSES, 0:M1],
                          preferred_element_type=jnp.float32)
    h1_slip = lrelu(s1)
    h2_slip = lrelu(jnp.dot(h1_slip, P[ROW_SW2:ROW_SW2 + M1, 0:M2],
                            preferred_element_type=jnp.float32)
                    + P[ROW_BIAS + 4:ROW_BIAS + 5, 0:M2])
    slip = (jnp.dot(h2_slip, P[ROW_SW3:ROW_SW3 + M2, 0:SLIP_OUT],
                    preferred_element_type=jnp.float32)
            + P[ROW_BIAS + 6:ROW_BIAS + 7, 0:SLIP_OUT])              # (BPAD, 8)

    mu = jax.nn.sigmoid(slip[:, 0:4])
    std = jnp.exp(slip[:, 4:8])

    pad = jnp.zeros((BPAD, LANES - NUM_CLASSES - SLIP_OUT), jnp.float32)
    out_ref[...] = jnp.concatenate([probs, mu, std, pad], axis=-1)   # single lane-dense store


# ------------------------- parameter init (deterministic, synthetic) -------------------------
def _uniform(key, shape, bound):
    return jax.random.uniform(key, shape, jnp.float32, -bound, bound)


def init_mlp(key, in_dim, hidden_dims, out_dim):
    layers = []
    d = in_dim
    for hdim in hidden_dims:
        key, k1, k2, k3 = jax.random.split(key, 4)
        bound = d ** -0.5
        layers.append({'w': _uniform(k1, (hdim, d), bound),       # PyTorch Linear layout (out, in)
                       'b': _uniform(k2, (hdim,), bound),
                       'gamma': 1.0 + 0.02 * jax.random.normal(k3, (hdim,), jnp.float32),
                       'beta': jnp.zeros((hdim,), jnp.float32)})
        d = hdim
    key, k1, k2 = jax.random.split(key, 3)
    bound = d ** -0.5
    layers.append({'w': _uniform(k1, (out_dim, d), bound),
                   'b': _uniform(k2, (out_dim,), bound)})
    return layers


def init_params(key):
    ks = jax.random.split(key, 8)
    cb = (NUM_KEYS * KERNEL_SIZE) ** -0.5
    lb = HIDDEN ** -0.5
    return dict(
        conv_w=_uniform(ks[0], (OUT_CHANNELS, NUM_KEYS, KERNEL_SIZE), cb),  # PyTorch Conv1d layout
        conv_b=_uniform(ks[1], (OUT_CHANNELS,), cb),
        wih=_uniform(ks[2], (NUM_LAYERS, 4 * HIDDEN, OUT_CHANNELS), lb),    # PyTorch LSTM layout
        whh=_uniform(ks[3], (NUM_LAYERS, 4 * HIDDEN, HIDDEN), lb),
        bih=_uniform(ks[4], (NUM_LAYERS, 4 * HIDDEN), lb),
        bhh=_uniform(ks[5], (NUM_LAYERS, 4 * HIDDEN), lb),
        road=init_mlp(ks[6], HIDDEN, MLP_HIDDEN, NUM_CLASSES),
        slip=init_mlp(ks[7], HIDDEN + NUM_CLASSES, MLP_HIDDEN, SLIP_OUT),
    )


def pack_params(p):
    """One-time packing OUTSIDE the jitted forward into a single (P_ROWS, 128) block:
    transpose weights to (in, out), fold eval-mode BatchNorm (running stats 0/1) into the
    preceding Linear, pre-add LSTM biases, and fold the Conv1d into layer-0's input
    projection."""
    def bn_fold(lyr):
        s = lyr['gamma'] / jnp.sqrt(jnp.float32(1.0 + BN_EPS))
        return lyr['w'].T * s[None, :], lyr['b'] * s + lyr['beta']   # (in, out), (out,)

    wih0 = p['wih'][0]                                  # (4H, C_out)
    wih1 = p['wih'][1].T                                # (H, 4H)
    whh0 = p['whh'][0].T                                # (H, 4H)
    whh1 = p['whh'][1].T

    # conv folded into layer-0 input projection
    W0 = jnp.zeros((KC_PAD, 4 * HIDDEN), jnp.float32)
    for k in range(KERNEL_SIZE):
        blk = p['conv_w'][:, :, k].T @ wih0.T           # (C_in, 4H)
        W0 = W0.at[k * NUM_KEYS:(k + 1) * NUM_KEYS, :].set(blk)
    b0 = p['conv_b'] @ wih0.T + p['bih'][0] + p['bhh'][0]
    b1 = p['bih'][1] + p['bhh'][1]

    # heads (BN folded into the Linear)
    rw1, rb1 = bn_fold(p['road'][0])                    # (32,64), (64,)
    rw2, rb2 = bn_fold(p['road'][1])                    # (64,32), (32,)
    rw3, rb3 = p['road'][2]['w'].T, p['road'][2]['b']   # (32,2), (2,)
    sw1, sb1 = bn_fold(p['slip'][0])                    # (34,64), (64,)
    sw1a, sw1b = sw1[:HIDDEN, :], sw1[HIDDEN:, :]       # (32,64), (2,64)
    sw2, sb2 = bn_fold(p['slip'][1])                    # (64,32), (32,)
    sw3, sb3 = p['slip'][2]['w'].T, p['slip'][2]['b']   # (32,8), (8,)

    wh1 = jnp.concatenate([rw1, sw1a], axis=1)          # (32, 128) fused head-1 weight
    bh1 = jnp.concatenate([rb1, sb1])                   # (128,)

    blk = jnp.zeros((P_ROWS, LANES), jnp.float32)

    def put(b, row, arr):
        arr = jnp.asarray(arr, jnp.float32)
        if arr.ndim == 1:
            arr = arr[None, :]
        return b.at[row:row + arr.shape[0], 0:arr.shape[1]].set(arr)

    blk = put(blk, ROW_W0, W0)
    blk = put(blk, ROW_WHH0, whh0)
    blk = put(blk, ROW_WIH1, wih1)
    blk = put(blk, ROW_WHH1, whh1)
    blk = put(blk, ROW_BIAS + 0, b0)
    blk = put(blk, ROW_BIAS + 1, b1)
    blk = put(blk, ROW_BIAS + 2, bh1)
    blk = put(blk, ROW_BIAS + 3, rb2)
    blk = put(blk, ROW_BIAS + 4, sb2)
    blk = put(blk, ROW_BIAS + 5, rb3)
    blk = put(blk, ROW_BIAS + 6, sb3)
    blk = put(blk, ROW_WH1, wh1)
    blk = put(blk, ROW_SW1B, sw1b)
    blk = put(blk, ROW_RW2, rw2)
    blk = put(blk, ROW_SW2, sw2)
    blk = put(blk, ROW_RW3, rw3)
    blk = put(blk, ROW_SW3, sw3)
    return blk


# ------------------------- forward (single fused Pallas call, 2 input DMAs) -------------------------
@jax.jit
def sruprs_forward(x, param_block):
    """x: (B, input_dim, seq_len) float32, exactly like the PyTorch module."""
    # t-major + batch padded to 8:  row = t*BPAD + b; im2col columns = k*C_in + c (zero-padded)
    xt = jnp.transpose(x, (2, 0, 1)).astype(jnp.float32)                 # (SEQ_LEN, B, C_in)
    xt = jnp.pad(xt, ((0, 0), (0, BPAD - BATCH), (0, 0)))                # (SEQ_LEN, BPAD, C_in)
    taps = [xt[k:k + L_OUT] for k in range(KERNEL_SIZE)]                 # each (L_OUT, BPAD, C_in)
    xim = jnp.concatenate(taps, axis=-1).reshape(L_OUT * BPAD, KC)       # (64, 18)
    xim = jnp.pad(xim, ((0, 0), (0, KC_PAD - KC)))                       # (64, 24)

    out = pl.pallas_call(
        sruprs_kernel,
        out_shape=jax.ShapeDtypeStruct((BPAD, LANES), jnp.float32),
        in_specs=[VSPEC, VSPEC],
        out_specs=VSPEC,
    )(xim, param_block)

    road = out[0:BATCH, 0:NUM_CLASSES]
    mu = out[0:BATCH, NUM_CLASSES:NUM_CLASSES + 4]
    std = out[0:BATCH, NUM_CLASSES + 4:NUM_CLASSES + 8]
    return road, mu, std


# ------------------------- pure-JAX reference (for verification) -------------------------
def ref_mlp(x, layers):
    h = x
    for lyr in layers[:-1]:
        y = h @ lyr['w'].T + lyr['b']
        y = y / jnp.sqrt(1.0 + BN_EPS) * lyr['gamma'] + lyr['beta']
        h = jnp.where(y >= 0, y, LEAKY_SLOPE * y)
    return h @ layers[-1]['w'].T + layers[-1]['b']


def ref_forward(x, p):
    conv = sum(jnp.einsum('bct,oc->bto', x[:, :, k:k + L_OUT], p['conv_w'][:, :, k])
               for k in range(KERNEL_SIZE)) + p['conv_b'][None, None, :]
    layer_in = conv
    for l in range(NUM_LAYERS):
        wih, whh = p['wih'][l], p['whh'][l]
        b = p['bih'][l] + p['bhh'][l]
        h = jnp.zeros((BATCH, HIDDEN)); c = jnp.zeros((BATCH, HIDDEN)); hs = []
        for t in range(L_OUT):
            g = layer_in[:, t, :] @ wih.T + h @ whh.T + b
            i = jax.nn.sigmoid(g[:, :HIDDEN]); f = jax.nn.sigmoid(g[:, HIDDEN:2 * HIDDEN])
            gg = jnp.tanh(g[:, 2 * HIDDEN:3 * HIDDEN]); o = jax.nn.sigmoid(g[:, 3 * HIDDEN:])
            c = f * c + i * gg; h = o * jnp.tanh(c); hs.append(h)
        layer_in = jnp.stack(hs, axis=1)
    enc = h
    probs = jax.nn.softmax(ref_mlp(enc, p['road']), axis=-1)
    onehot = jax.nn.one_hot(jnp.argmax(probs, axis=-1), NUM_CLASSES, dtype=jnp.float32)
    out = ref_mlp(jnp.concatenate([enc, onehot], axis=1), p['slip'])
    return probs, jax.nn.sigmoid(out[:, 0:4]), jnp.exp(out[:, 4:8])


# ------------------------- main -------------------------
if __name__ == "__main__":
    key = jax.random.PRNGKey(0)
    kx, kp = jax.random.split(key)
    x = jax.random.normal(kx, (BATCH, NUM_KEYS, SEQ_LEN), jnp.float32)
    params = init_params(kp)
    param_block = pack_params(params)        # one-time packing, outside the jitted forward

    road, mu, std = jax.block_until_ready(sruprs_forward(x, param_block))

    assert road.shape == (BATCH, NUM_CLASSES)
    assert mu.shape == (BATCH, 4) and std.shape == (BATCH, 4)
    assert bool(jnp.all(jnp.isfinite(road)) & jnp.all(jnp.isfinite(mu)) & jnp.all(jnp.isfinite(std)))

    road_r, mu_r, std_r = ref_forward(x, params)
    assert jnp.allclose(road, road_r, rtol=2e-2, atol=2e-3)
    # slip heads depend on the hard (argmax) road state; only compare when argmax agrees
    if bool(jnp.all(jnp.argmax(road, -1) == jnp.argmax(road_r, -1))):
        assert jnp.allclose(mu, mu_r, rtol=2e-2, atol=2e-3)
        assert jnp.allclose(std, std_r, rtol=2e-2, atol=2e-3)

    print("KERNEL_OK")
</pallas_src>

<mosaic_0001>
module attributes {stable_mosaic.version = 11 : i64} {
  func.func @sruprs_kernel(%arg0: memref<64x24xf32, #tpu.memory_space<vmem>>, %arg1: memref<360x128xf32, #tpu.memory_space<vmem>>, %arg2: memref<8x128xf32, #tpu.memory_space<vmem>>) attributes {dimension_semantics = [], scalar_prefetch = 0 : i64, scratch_operands = 0 : i64, tpu.core_type = #tpu.core_type<tc>} {
    %c0 = arith.constant 0 : index
    %c0_0 = arith.constant 0 : index
    %0 = vector.load %arg0[%c0, %c0_0] : memref<64x24xf32, #tpu.memory_space<vmem>>, vector<64x24xf32>
    %c0_1 = arith.constant 0 : index
    %c0_2 = arith.constant 0 : index
    %1 = vector.load %arg1[%c0_1, %c0_2] : memref<360x128xf32, #tpu.memory_space<vmem>>, vector<24x128xf32>
    %cst = arith.constant dense<0.000000e+00> : vector<64x128xf32>
    %2 = tpu.matmul %0, %1, %cst {dimension_numbers = #tpu.dot_dimension_numbers<[1], [0], [0], [1], [0, 0, 1, 1], [], []>} : vector<64x24xf32>, vector<24x128xf32>, vector<64x128xf32> -> vector<64x128xf32>
    %c120 = arith.constant 120 : index
    %c0_3 = arith.constant 0 : index
    %3 = vector.load %arg1[%c120, %c0_3] : memref<360x128xf32, #tpu.memory_space<vmem>>, vector<1x128xf32>
    %4 = vector.broadcast %3 : vector<1x128xf32> to vector<64x128xf32>
    %5 = arith.addf %2, %4 : vector<64x128xf32>
    %c24 = arith.constant 24 : index
    %c0_4 = arith.constant 0 : index
    %6 = vector.load %arg1[%c24, %c0_4] : memref<360x128xf32, #tpu.memory_space<vmem>>, vector<32x128xf32>
    %cst_5 = arith.constant 0.000000e+00 : f32
    %7 = vector.broadcast %cst_5 : f32 to vector<8x32xf32>
    %cst_6 = arith.constant 0.000000e+00 : f32
    %8 = vector.broadcast %cst_6 : f32 to vector<8x32xf32>
    %9 = vector.extract_strided_slice %5 {offsets = [0, 0], sizes = [8, 128], strides = [1, 1]} : vector<64x128xf32> to vector<8x128xf32>
    %cst_7 = arith.constant dense<0.000000e+00> : vector<8x128xf32>
    %10 = tpu.matmul %7, %6, %cst_7 {dimension_numbers = #tpu.dot_dimension_numbers<[1], [0], [0], [1], [0, 0, 1, 1], [], []>} : vector<8x32xf32>, vector<32x128xf32>, vector<8x128xf32> -> vector<8x128xf32>
    %11 = arith.addf %9, %10 : vector<8x128xf32>
    %12 = arith.negf %11 : vector<8x128xf32>
    %13 = math.exp %12 : vector<8x128xf32>
    %cst_8 = arith.constant 1.000000e+00 : f32
    %14 = vector.broadcast %cst_8 : f32 to vector<8x128xf32>
    %15 = arith.addf %14, %13 : vector<8x128xf32>
    %16 = arith.divf %14, %15 : vector<8x128xf32>
    %17 = math.tanh %11 : vector<8x128xf32>
    %18 = vector.extract_strided_slice %16 {offsets = [0, 0], sizes = [8, 32], strides = [1, 1]} : vector<8x128xf32> to vector<8x32xf32>
    %19 = vector.extract_strided_slice %16 {offsets = [0, 32], sizes = [8, 32], strides = [1, 1]} : vector<8x128xf32> to vector<8x32xf32>
    %20 = vector.extract_strided_slice %17 {offsets = [0, 64], sizes = [8, 32], strides = [1, 1]} : vector<8x128xf32> to vector<8x32xf32>
    %21 = vector.extract_strided_slice %16 {offsets = [0, 96], sizes = [8, 32], strides = [1, 1]} : vector<8x128xf32> to vector<8x32xf32>
    %22 = arith.mulf %19, %8 : vector<8x32xf32>
    %23 = arith.mulf %18, %20 : vector<8x32xf32>
    %24 = arith.addf %22, %23 : vector<8x32xf32>
    %25 = math.tanh %24 : vector<8x32xf32>
    %26 = arith.mulf %21, %25 : vector<8x32xf32>
    %27 = vector.extract_strided_slice %5 {offsets = [8, 0], sizes = [8, 128], strides = [1, 1]} : vector<64x128xf32> to vector<8x128xf32>
    %cst_9 = arith.constant dense<0.000000e+00> : vector<8x128xf32>
    %28 = tpu.matmul %26, %6, %cst_9 {dimension_numbers = #tpu.dot_dimension_numbers<[1], [0], [0], [1], [0, 0, 1, 1], [], []>} : vector<8x32xf32>, vector<32x128xf32>, vector<8x128xf32> -> vector<8x128xf32>
    %29 = arith.addf %27, %28 : vector<8x128xf32>
    %30 = arith.negf %29 : vector<8x128xf32>
    %31 = math.exp %30 : vector<8x128xf32>
    %cst_10 = arith.constant 1.000000e+00 : f32
    %32 = vector.broadcast %cst_10 : f32 to vector<8x128xf32>
    %33 = arith.addf %32, %31 : vector<8x128xf32>
    %34 = arith.divf %32, %33 : vector<8x128xf32>
    %35 = math.tanh %29 : vector<8x128xf32>
    %36 = vector.extract_strided_slice %34 {offsets = [0, 0], sizes = [8, 32], strides = [1, 1]} : vector<8x128xf32> to vector<8x32xf32>
    %37 = vector.extract_strided_slice %34 {offsets = [0, 32], sizes = [8, 32], strides = [1, 1]} : vector<8x128xf32> to vector<8x32xf32>
    %38 = vector.extract_strided_slice %35 {offsets = [0, 64], sizes = [8, 32], strides = [1, 1]} : vector<8x128xf32> to vector<8x32xf32>
    %39 = vector.extract_strided_slice %34 {offsets = [0, 96], sizes = [8, 32], strides = [1, 1]} : vector<8x128xf32> to vector<8x32xf32>
    %40 = arith.mulf %37, %24 : vector<8x32xf32>
    %41 = arith.mulf %36, %38 : vector<8x32xf32>
    %42 = arith.addf %40, %41 : vector<8x32xf32>
    %43 = math.tanh %42 : vector<8x32xf32>
    %44 = arith.mulf %39, %43 : vector<8x32xf32>
    %45 = vector.extract_strided_slice %5 {offsets = [16, 0], sizes = [8, 128], strides = [1, 1]} : vector<64x128xf32> to vector<8x128xf32>
    %cst_11 = arith.constant dense<0.000000e+00> : vector<8x128xf32>
    %46 = tpu.matmul %44, %6, %cst_11 {dimension_numbers = #tpu.dot_dimension_numbers<[1], [0], [0], [1], [0, 0, 1, 1], [], []>} : vector<8x32xf32>, vector<32x128xf32>, vector<8x128xf32> -> vector<8x128xf32>
    %47 = arith.addf %45, %46 : vector<8x128xf32>
    %48 = arith.negf %47 : vector<8x128xf32>
    %49 = math.exp %48 : vector<8x128xf32>
    %cst_12 = arith.constant 1.000000e+00 : f32
    %50 = vector.broadcast %cst_12 : f32 to vector<8x128xf32>
    %51 = arith.addf %50, %49 : vector<8x128xf32>
    %52 = arith.divf %50, %51 : vector<8x128xf32>
    %53 = math.tanh %47 : vector<8x128xf32>
    %54 = vector.extract_strided_slice %52 {offsets = [0, 0], sizes = [8, 32], strides = [1, 1]} : vector<8x128xf32> to vector<8x32xf32>
    %55 = vector.extract_strided_slice %52 {offsets = [0, 32], sizes = [8, 32], strides = [1, 1]} : vector<8x128xf32> to vector<8x32xf32>
    %56 = vector.extract_strided_slice %53 {offsets = [0, 64], sizes = [8, 32], strides = [1, 1]} : vector<8x128xf32> to vector<8x32xf32>
    %57 = vector.extract_strided_slice %52 {offsets = [0, 96], sizes = [8, 32], strides = [1, 1]} : vector<8x128xf32> to vector<8x32xf32>
    %58 = arith.mulf %55, %42 : vector<8x32xf32>
    %59 = arith.mulf %54, %56 : vector<8x32xf32>
    %60 = arith.addf %58, %59 : vector<8x32xf32>
    %61 = math.tanh %60 : vector<8x32xf32>
    %62 = arith.mulf %57, %61 : vector<8x32xf32>
    %63 = vector.extract_strided_slice %5 {offsets = [24, 0], sizes = [8, 128], strides = [1, 1]} : vector<64x128xf32> to vector<8x128xf32>
    %cst_13 = arith.constant dense<0.000000e+00> : vector<8x128xf32>
    %64 = tpu.matmul %62, %6, %cst_13 {dimension_numbers = #tpu.dot_dimension_numbers<[1], [0], [0], [1], [0, 0, 1, 1], [], []>} : vector<8x32xf32>, vector<32x128xf32>, vector<8x128xf32> -> vector<8x128xf32>
    %65 = arith.addf %63, %64 : vector<8x128xf32>
    %66 = arith.negf %65 : vector<8x128xf32>
    %67 = math.exp %66 : vector<8x128xf32>
    %cst_14 = arith.constant 1.000000e+00 : f32
    %68 = vector.broadcast %cst_14 : f32 to vector<8x128xf32>
    %69 = arith.addf %68, %67 : vector<8x128xf32>
    %70 = arith.divf %68, %69 : vector<8x128xf32>
    %71 = math.tanh %65 : vector<8x128xf32>
    %72 = vector.extract_strided_slice %70 {offsets = [0, 0], sizes = [8, 32], strides = [1, 1]} : vector<8x128xf32> to vector<8x32xf32>
    %73 = vector.extract_strided_slice %70 {offsets = [0, 32], sizes = [8, 32], strides = [1, 1]} : vector<8x128xf32> to vector<8x32xf32>
    %74 = vector.extract_strided_slice %71 {offsets = [0, 64], sizes = [8, 32], strides = [1, 1]} : vector<8x128xf32> to vector<8x32xf32>
    %75 = vector.extract_strided_slice %70 {offsets = [0, 96], sizes = [8, 32], strides = [1, 1]} : vector<8x128xf32> to vector<8x32xf32>
    %76 = arith.mulf %73, %60 : vector<8x32xf32>
    %77 = arith.mulf %72, %74 : vector<8x32xf32>
    %78 = arith.addf %76, %77 : vector<8x32xf32>
    %79 = math.tanh %78 : vector<8x32xf32>
    %80 = arith.mulf %75, %79 : vector<8x32xf32>
    %81 = vector.extract_strided_slice %5 {offsets = [32, 0], sizes = [8, 128], strides = [1, 1]} : vector<64x128xf32> to vector<8x128xf32>
    %cst_15 = arith.constant dense<0.000000e+00> : vector<8x128xf32>
    %82 = tpu.matmul %80, %6, %cst_15 {dimension_numbers = #tpu.dot_dimension_numbers<[1], [0], [0], [1], [0, 0, 1, 1], [], []>} : vector<8x32xf32>, vector<32x128xf32>, vector<8x128xf32> -> vector<8x128xf32>
    %83 = arith.addf %81, %82 : vector<8x128xf32>
    %84 = arith.negf %83 : vector<8x128xf32>
    %85 = math.exp %84 : vector<8x128xf32>
    %cst_16 = arith.constant 1.000000e+00 : f32
    %86 = vector.broadcast %cst_16 : f32 to vector<8x128xf32>
    %87 = arith.addf %86, %85 : vector<8x128xf32>
    %88 = arith.divf %86, %87 : vector<8x128xf32>
    %89 = math.tanh %83 : vector<8x128xf32>
    %90 = vector.extract_strided_slice %88 {offsets = [0, 0], sizes = [8, 32], strides = [1, 1]} : vector<8x128xf32> to vector<8x32xf32>
    %91 = vector.extract_strided_slice %88 {offsets = [0, 32], sizes = [8, 32], strides = [1, 1]} : vector<8x128xf32> to vector<8x32xf32>
    %92 = vector.extract_strided_slice %89 {offsets = [0, 64], sizes = [8, 32], strides = [1, 1]} : vector<8x128xf32> to vector<8x32xf32>
    %93 = vector.extract_strided_slice %88 {offsets = [0, 96], sizes = [8, 32], strides = [1, 1]} : vector<8x128xf32> to vector<8x32xf32>
    %94 = arith.mulf %91, %78 : vector<8x32xf32>
    %95 = arith.mulf %90, %92 : vector<8x32xf32>
    %96 = arith.addf %94, %95 : vector<8x32xf32>
    %97 = math.tanh %96 : vector<8x32xf32>
    %98 = arith.mulf %93, %97 : vector<8x32xf32>
    %99 = vector.extract_strided_slice %5 {offsets = [40, 0], sizes = [8, 128], strides = [1, 1]} : vector<64x128xf32> to vector<8x128xf32>
    %cst_17 = arith.constant dense<0.000000e+00> : vector<8x128xf32>
    %100 = tpu.matmul %98, %6, %cst_17 {dimension_numbers = #tpu.dot_dimension_numbers<[1], [0], [0], [1], [0, 0, 1, 1], [], []>} : vector<8x32xf32>, vector<32x128xf32>, vector<8x128xf32> -> vector<8x128xf32>
    %101 = arith.addf %99, %100 : vector<8x128xf32>
    %102 = arith.negf %101 : vector<8x128xf32>
    %103 = math.exp %102 : vector<8x128xf32>
    %cst_18 = arith.constant 1.000000e+00 : f32
    %104 = vector.broadcast %cst_18 : f32 to vector<8x128xf32>
    %105 = arith.addf %104, %103 : vector<8x128xf32>
    %106 = arith.divf %104, %105 : vector<8x128xf32>
    %107 = math.tanh %101 : vector<8x128xf32>
    %108 = vector.extract_strided_slice %106 {offsets = [0, 0], sizes = [8, 32], strides = [1, 1]} : vector<8x128xf32> to vector<8x32xf32>
    %109 = vector.extract_strided_slice %106 {offsets = [0, 32], sizes = [8, 32], strides = [1, 1]} : vector<8x128xf32> to vector<8x32xf32>
    %110 = vector.extract_strided_slice %107 {offsets = [0, 64], sizes = [8, 32], strides = [1, 1]} : vector<8x128xf32> to vector<8x32xf32>
    %111 = vector.extract_strided_slice %106 {offsets = [0, 96], sizes = [8, 32], strides = [1, 1]} : vector<8x128xf32> to vector<8x32xf32>
    %112 = arith.mulf %109, %96 : vector<8x32xf32>
    %113 = arith.mulf %108, %110 : vector<8x32xf32>
    %114 = arith.addf %112, %113 : vector<8x32xf32>
    %115 = math.tanh %114 : vector<8x32xf32>
    %116 = arith.mulf %111, %115 : vector<8x32xf32>
    %117 = vector.extract_strided_slice %5 {offsets = [48, 0], sizes = [8, 128], strides = [1, 1]} : vector<64x128xf32> to vector<8x128xf32>
    %cst_19 = arith.constant dense<0.000000e+00> : vector<8x128xf32>
    %118 = tpu.matmul %116, %6, %cst_19 {dimension_numbers = #tpu.dot_dimension_numbers<[1], [0], [0], [1], [0, 0, 1, 1], [], []>} : vector<8x32xf32>, vector<32x128xf32>, vector<8x128xf32> -> vector<8x128xf32>
    %119 = arith.addf %117, %118 : vector<8x128xf32>
    %120 = arith.negf %119 : vector<8x128xf32>
    %121 = math.exp %120 : vector<8x128xf32>
    %cst_20 = arith.constant 1.000000e+00 : f32
    %122 = vector.broadcast %cst_20 : f32 to vector<8x128xf32>
    %123 = arith.addf %122, %121 : vector<8x128xf32>
    %124 = arith.divf %122, %123 : vector<8x128xf32>
    %125 = math.tanh %119 : vector<8x128xf32>
    %126 = vector.extract_strided_slice %124 {offsets = [0, 0], sizes = [8, 32], strides = [1, 1]} : vector<8x128xf32> to vector<8x32xf32>
    %127 = vector.extract_strided_slice %124 {offsets = [0, 32], sizes = [8, 32], strides = [1, 1]} : vector<8x128xf32> to vector<8x32xf32>
    %128 = vector.extract_strided_slice %125 {offsets = [0, 64], sizes = [8, 32], strides = [1, 1]} : vector<8x128xf32> to vector<8x32xf32>
    %129 = vector.extract_strided_slice %124 {offsets = [0, 96], sizes = [8, 32], strides = [1, 1]} : vector<8x128xf32> to vector<8x32xf32>
    %130 = arith.mulf %127, %114 : vector<8x32xf32>
    %131 = arith.mulf %126, %128 : vector<8x32xf32>
    %132 = arith.addf %130, %131 : vector<8x32xf32>
    %133 = math.tanh %132 : vector<8x32xf32>
    %134 = arith.mulf %129, %133 : vector<8x32xf32>
    %135 = vector.extract_strided_slice %5 {offsets = [56, 0], sizes = [8, 128], strides = [1, 1]} : vector<64x128xf32> to vector<8x128xf32>
    %cst_21 = arith.constant dense<0.000000e+00> : vector<8x128xf32>
    %136 = tpu.matmul %134, %6, %cst_21 {dimension_numbers = #tpu.dot_dimension_numbers<[1], [0], [0], [1], [0, 0, 1, 1], [], []>} : vector<8x32xf32>, vector<32x128xf32>, vector<8x128xf32> -> vector<8x128xf32>
    %137 = arith.addf %135, %136 : vector<8x128xf32>
    %138 = arith.negf %137 : vector<8x128xf32>
    %139 = math.exp %138 : vector<8x128xf32>
    %cst_22 = arith.constant 1.000000e+00 : f32
    %140 = vector.broadcast %cst_22 : f32 to vector<8x128xf32>
    %141 = arith.addf %140, %139 : vector<8x128xf32>
    %142 = arith.divf %140, %141 : vector<8x128xf32>
    %143 = math.tanh %137 : vector<8x128xf32>
    %144 = vector.extract_strided_slice %142 {offsets = [0, 0], sizes = [8, 32], strides = [1, 1]} : vector<8x128xf32> to vector<8x32xf32>
    %145 = vector.extract_strided_slice %142 {offsets = [0, 32], sizes = [8, 32], strides = [1, 1]} : vector<8x128xf32> to vector<8x32xf32>
    %146 = vector.extract_strided_slice %143 {offsets = [0, 64], sizes = [8, 32], strides = [1, 1]} : vector<8x128xf32> to vector<8x32xf32>
    %147 = vector.extract_strided_slice %142 {offsets = [0, 96], sizes = [8, 32], strides = [1, 1]} : vector<8x128xf32> to vector<8x32xf32>
    %148 = arith.mulf %145, %132 : vector<8x32xf32>
    %149 = arith.mulf %144, %146 : vector<8x32xf32>
    %150 = arith.addf %148, %149 : vector<8x32xf32>
    %151 = math.tanh %150 : vector<8x32xf32>
    %152 = arith.mulf %147, %151 : vector<8x32xf32>
    %153 = tpu.concatenate %26, %44, %62, %80, %98, %116, %134, %152 in 0 : vector<8x32xf32>, vector<8x32xf32>, vector<8x32xf32>, vector<8x32xf32>, vector<8x32xf32>, vector<8x32xf32>, vector<8x32xf32>, vector<8x32xf32> -> vector<64x32xf32>
    %c56 = arith.constant 56 : index
    %c0_23 = arith.constant 0 : index
    %154 = vector.load %arg1[%c56, %c0_23] : memref<360x128xf32, #tpu.memory_space<vmem>>, vector<32x128xf32>
    %cst_24 = arith.constant dense<0.000000e+00> : vector<64x128xf32>
    %155 = tpu.matmul %153, %154, %cst_24 {dimension_numbers = #tpu.dot_dimension_numbers<[1], [0], [0], [1], [0, 0, 1, 1], [], []>} : vector<64x32xf32>, vector<32x128xf32>, vector<64x128xf32> -> vector<64x128xf32>
    %c121 = arith.constant 121 : index
    %c0_25 = arith.constant 0 : index
    %156 = vector.load %arg1[%c121, %c0_25] : memref<360x128xf32, #tpu.memory_space<vmem>>, vector<1x128xf32>
    %157 = vector.broadcast %156 : vector<1x128xf32> to vector<64x128xf32>
    %158 = arith.addf %155, %157 : vector<64x128xf32>
    %c88 = arith.constant 88 : index
    %c0_26 = arith.constant 0 : index
    %159 = vector.load %arg1[%c88, %c0_26] : memref<360x128xf32, #tpu.memory_space<vmem>>, vector<32x128xf32>
    %cst_27 = arith.constant 0.000000e+00 : f32
    %160 = vector.broadcast %cst_27 : f32 to vector<8x32xf32>
    %cst_28 = arith.constant 0.000000e+00 : f32
    %161 = vector.broadcast %cst_28 : f32 to vector<8x32xf32>
    %162 = vector.extract_strided_slice %158 {offsets = [0, 0], sizes = [8, 128], strides = [1, 1]} : vector<64x128xf32> to vector<8x128xf32>
    %cst_29 = arith.constant dense<0.000000e+00> : vector<8x128xf32>
    %163 = tpu.matmul %160, %159, %cst_29 {dimension_numbers = #tpu.dot_dimension_numbers<[1], [0], [0], [1], [0, 0, 1, 1], [], []>} : vector<8x32xf32>, vector<32x128xf32>, vector<8x128xf32> -> vector<8x128xf32>
    %164 = arith.addf %162, %163 : vector<8x128xf32>
    %165 = arith.negf %164 : vector<8x128xf32>
    %166 = math.exp %165 : vector<8x128xf32>
    %cst_30 = arith.constant 1.000000e+00 : f32
    %167 = vector.broadcast %cst_30 : f32 to vector<8x128xf32>
    %168 = arith.addf %167, %166 : vector<8x128xf32>
    %169 = arith.divf %167, %168 : vector<8x128xf32>
    %170 = math.tanh %164 : vector<8x128xf32>
    %171 = vector.extract_strided_slice %169 {offsets = [0, 0], sizes = [8, 32], strides = [1, 1]} : vector<8x128xf32> to vector<8x32xf32>
    %172 = vector.extract_strided_slice %169 {offsets = [0, 32], sizes = [8, 32], strides = [1, 1]} : vector<8x128xf32> to vector<8x32xf32>
    %173 = vector.extract_strided_slice %170 {offsets = [0, 64], sizes = [8, 32], strides = [1, 1]} : vector<8x128xf32> to vector<8x32xf32>
    %174 = vector.extract_strided_slice %169 {offsets = [0, 96], sizes = [8, 32], strides = [1, 1]} : vector<8x128xf32> to vector<8x32xf32>
    %175 = arith.mulf %172, %161 : vector<8x32xf32>
    %176 = arith.mulf %171, %173 : vector<8x32xf32>
    %177 = arith.addf %175, %176 : vector<8x32xf32>
    %178 = math.tanh %177 : vector<8x32xf32>
    %179 = arith.mulf %174, %178 : vector<8x32xf32>
    %180 = vector.extract_strided_slice %158 {offsets = [8, 0], sizes = [8, 128], strides = [1, 1]} : vector<64x128xf32> to vector<8x128xf32>
    %cst_31 = arith.constant dense<0.000000e+00> : vector<8x128xf32>
    %181 = tpu.matmul %179, %159, %cst_31 {dimension_numbers = #tpu.dot_dimension_numbers<[1], [0], [0], [1], [0, 0, 1, 1], [], []>} : vector<8x32xf32>, vector<32x128xf32>, vector<8x128xf32> -> vector<8x128xf32>
    %182 = arith.addf %180, %181 : vector<8x128xf32>
    %183 = arith.negf %182 : vector<8x128xf32>
    %184 = math.exp %183 : vector<8x128xf32>
    %cst_32 = arith.constant 1.000000e+00 : f32
    %185 = vector.broadcast %cst_32 : f32 to vector<8x128xf32>
    %186 = arith.addf %185, %184 : vector<8x128xf32>
    %187 = arith.divf %185, %186 : vector<8x128xf32>
    %188 = math.tanh %182 : vector<8x128xf32>
    %189 = vector.extract_strided_slice %187 {offsets = [0, 0], sizes = [8, 32], strides = [1, 1]} : vector<8x128xf32> to vector<8x32xf32>
    %190 = vector.extract_strided_slice %187 {offsets = [0, 32], sizes = [8, 32], strides = [1, 1]} : vector<8x128xf32> to vector<8x32xf32>
    %191 = vector.extract_strided_slice %188 {offsets = [0, 64], sizes = [8, 32], strides = [1, 1]} : vector<8x128xf32> to vector<8x32xf32>
    %192 = vector.extract_strided_slice %187 {offsets = [0, 96], sizes = [8, 32], strides = [1, 1]} : vector<8x128xf32> to vector<8x32xf32>
    %193 = arith.mulf %190, %177 : vector<8x32xf32>
    %194 = arith.mulf %189, %191 : vector<8x32xf32>
    %195 = arith.addf %193, %194 : vector<8x32xf32>
    %196 = math.tanh %195 : vector<8x32xf32>
    %197 = arith.mulf %192, %196 : vector<8x32xf32>
    %198 = vector.extract_strided_slice %158 {offsets = [16, 0], sizes = [8, 128], strides = [1, 1]} : vector<64x128xf32> to vector<8x128xf32>
    %cst_33 = arith.constant dense<0.000000e+00> : vector<8x128xf32>
    %199 = tpu.matmul %197, %159, %cst_33 {dimension_numbers = #tpu.dot_dimension_numbers<[1], [0], [0], [1], [0, 0, 1, 1], [], []>} : vector<8x32xf32>, vector<32x128xf32>, vector<8x128xf32> -> vector<8x128xf32>
    %200 = arith.addf %198, %199 : vector<8x128xf32>
    %201 = arith.negf %200 : vector<8x128xf32>
    %202 = math.exp %201 : vector<8x128xf32>
    %cst_34 = arith.constant 1.000000e+00 : f32
    %203 = vector.broadcast %cst_34 : f32 to vector<8x128xf32>
    %204 = arith.addf %203, %202 : vector<8x128xf32>
    %205 = arith.divf %203, %204 : vector<8x128xf32>
    %206 = math.tanh %200 : vector<8x128xf32>
    %207 = vector.extract_strided_slice %205 {offsets = [0, 0], sizes = [8, 32], strides = [1, 1]} : vector<8x128xf32> to vector<8x32xf32>
    %208 = vector.extract_strided_slice %205 {offsets = [0, 32], sizes = [8, 32], strides = [1, 1]} : vector<8x128xf32> to vector<8x32xf32>
    %209 = vector.extract_strided_slice %206 {offsets = [0, 64], sizes = [8, 32], strides = [1, 1]} : vector<8x128xf32> to vector<8x32xf32>
    %210 = vector.extract_strided_slice %205 {offsets = [0, 96], sizes = [8, 32], strides = [1, 1]} : vector<8x128xf32> to vector<8x32xf32>
    %211 = arith.mulf %208, %195 : vector<8x32xf32>
    %212 = arith.mulf %207, %209 : vector<8x32xf32>
    %213 = arith.addf %211, %212 : vector<8x32xf32>
    %214 = math.tanh %213 : vector<8x32xf32>
    %215 = arith.mulf %210, %214 : vector<8x32xf32>
    %216 = vector.extract_strided_slice %158 {offsets = [24, 0], sizes = [8, 128], strides = [1, 1]} : vector<64x128xf32> to vector<8x128xf32>
    %cst_35 = arith.constant dense<0.000000e+00> : vector<8x128xf32>
    %217 = tpu.matmul %215, %159, %cst_35 {dimension_numbers = #tpu.dot_dimension_numbers<[1], [0], [0], [1], [0, 0, 1, 1], [], []>} : vector<8x32xf32>, vector<32x128xf32>, vector<8x128xf32> -> vector<8x128xf32>
    %218 = arith.addf %216, %217 : vector<8x128xf32>
    %219 = arith.negf %218 : vector<8x128xf32>
    %220 = math.exp %219 : vector<8x128xf32>
    %cst_36 = arith.constant 1.000000e+00 : f32
    %221 = vector.broadcast %cst_36 : f32 to vector<8x128xf32>
    %222 = arith.addf %221, %220 : vector<8x128xf32>
    %223 = arith.divf %221, %222 : vector<8x128xf32>
    %224 = math.tanh %218 : vector<8x128xf32>
    %225 = vector.extract_strided_slice %223 {offsets = [0, 0], sizes = [8, 32], strides = [1, 1]} : vector<8x128xf32> to vector<8x32xf32>
    %226 = vector.extract_strided_slice %223 {offsets = [0, 32], sizes = [8, 32], strides = [1, 1]} : vector<8x128xf32> to vector<8x32xf32>
    %227 = vector.extract_strided_slice %224 {offsets = [0, 64], sizes = [8, 32], strides = [1, 1]} : vector<8x128xf32> to vector<8x32xf32>
    %228 = vector.extract_strided_slice %223 {offsets = [0, 96], sizes = [8, 32], strides = [1, 1]} : vector<8x128xf32> to vector<8x32xf32>
    %229 = arith.mulf %226, %213 : vector<8x32xf32>
    %230 = arith.mulf %225, %227 : vector<8x32xf32>
    %231 = arith.addf %229, %230 : vector<8x32xf32>
    %232 = math.tanh %231 : vector<8x32xf32>
    %233 = arith.mulf %228, %232 : vector<8x32xf32>
    %234 = vector.extract_strided_slice %158 {offsets = [32, 0], sizes = [8, 128], strides = [1, 1]} : vector<64x128xf32> to vector<8x128xf32>
    %cst_37 = arith.constant dense<0.000000e+00> : vector<8x128xf32>
    %235 = tpu.matmul %233, %159, %cst_37 {dimension_numbers = #tpu.dot_dimension_numbers<[1], [0], [0], [1], [0, 0, 1, 1], [], []>} : vector<8x32xf32>, vector<32x128xf32>, vector<8x128xf32> -> vector<8x128xf32>
    %236 = arith.addf %234, %235 : vector<8x128xf32>
    %237 = arith.negf %236 : vector<8x128xf32>
    %238 = math.exp %237 : vector<8x128xf32>
    %cst_38 = arith.constant 1.000000e+00 : f32
    %239 = vector.broadcast %cst_38 : f32 to vector<8x128xf32>
    %240 = arith.addf %239, %238 : vector<8x128xf32>
    %241 = arith.divf %239, %240 : vector<8x128xf32>
    %242 = math.tanh %236 : vector<8x128xf32>
    %243 = vector.extract_strided_slice %241 {offsets = [0, 0], sizes = [8, 32], strides = [1, 1]} : vector<8x128xf32> to vector<8x32xf32>
    %244 = vector.extract_strided_slice %241 {offsets = [0, 32], sizes = [8, 32], strides = [1, 1]} : vector<8x128xf32> to vector<8x32xf32>
    %245 = vector.extract_strided_slice %242 {offsets = [0, 64], sizes = [8, 32], strides = [1, 1]} : vector<8x128xf32> to vector<8x32xf32>
    %246 = vector.extract_strided_slice %241 {offsets = [0, 96], sizes = [8, 32], strides = [1, 1]} : vector<8x128xf32> to vector<8x32xf32>
    %247 = arith.mulf %244, %231 : vector<8x32xf32>
    %248 = arith.mulf %243, %245 : vector<8x32xf32>
    %249 = arith.addf %247, %248 : vector<8x32xf32>
    %250 = math.tanh %249 : vector<8x32xf32>
    %251 = arith.mulf %246, %250 : vector<8x32xf32>
    %252 = vector.extract_strided_slice %158 {offsets = [40, 0], sizes = [8, 128], strides = [1, 1]} : vector<64x128xf32> to vector<8x128xf32>
    %cst_39 = arith.constant dense<0.000000e+00> : vector<8x128xf32>
    %253 = tpu.matmul %251, %159, %cst_39 {dimension_numbers = #tpu.dot_dimension_numbers<[1], [0], [0], [1], [0, 0, 1, 1], [], []>} : vector<8x32xf32>, vector<32x128xf32>, vector<8x128xf32> -> vector<8x128xf32>
    %254 = arith.addf %252, %253 : vector<8x128xf32>
    %255 = arith.negf %254 : vector<8x128xf32>
    %256 = math.exp %255 : vector<8x128xf32>
    %cst_40 = arith.constant 1.000000e+00 : f32
    %257 = vector.broadcast %cst_40 : f32 to vector<8x128xf32>
    %258 = arith.addf %257, %256 : vector<8x128xf32>
    %259 = arith.divf %257, %258 : vector<8x128xf32>
    %260 = math.tanh %254 : vector<8x128xf32>
    %261 = vector.extract_strided_slice %259 {offsets = [0, 0], sizes = [8, 32], strides = [1, 1]} : vector<8x128xf32> to vector<8x32xf32>
    %262 = vector.extract_strided_slice %259 {offsets = [0, 32], sizes = [8, 32], strides = [1, 1]} : vector<8x128xf32> to vector<8x32xf32>
    %263 = vector.extract_strided_slice %260 {offsets = [0, 64], sizes = [8, 32], strides = [1, 1]} : vector<8x128xf32> to vector<8x32xf32>
    %264 = vector.extract_strided_slice %259 {offsets = [0, 96], sizes = [8, 32], strides = [1, 1]} : vector<8x128xf32> to vector<8x32xf32>
    %265 = arith.mulf %262, %249 : vector<8x32xf32>
    %266 = arith.mulf %261, %263 : vector<8x32xf32>
    %267 = arith.addf %265, %266 : vector<8x32xf32>
    %268 = math.tanh %267 : vector<8x32xf32>
    %269 = arith.mulf %264, %268 : vector<8x32xf32>
    %270 = vector.extract_strided_slice %158 {offsets = [48, 0], sizes = [8, 128], strides = [1, 1]} : vector<64x128xf32> to vector<8x128xf32>
    %cst_41 = arith.constant dense<0.000000e+00> : vector<8x128xf32>
    %271 = tpu.matmul %269, %159, %cst_41 {dimension_numbers = #tpu.dot_dimension_numbers<[1], [0], [0], [1], [0, 0, 1, 1], [], []>} : vector<8x32xf32>, vector<32x128xf32>, vector<8x128xf32> -> vector<8x128xf32>
    %272 = arith.addf %270, %271 : vector<8x128xf32>
    %273 = arith.negf %272 : vector<8x128xf32>
    %274 = math.exp %273 : vector<8x128xf32>
    %cst_42 = arith.constant 1.000000e+00 : f32
    %275 = vector.broadcast %cst_42 : f32 to vector<8x128xf32>
    %276 = arith.addf %275, %274 : vector<8x128xf32>
    %277 = arith.divf %275, %276 : vector<8x128xf32>
    %278 = math.tanh %272 : vector<8x128xf32>
    %279 = vector.extract_strided_slice %277 {offsets = [0, 0], sizes = [8, 32], strides = [1, 1]} : vector<8x128xf32> to vector<8x32xf32>
    %280 = vector.extract_strided_slice %277 {offsets = [0, 32], sizes = [8, 32], strides = [1, 1]} : vector<8x128xf32> to vector<8x32xf32>
    %281 = vector.extract_strided_slice %278 {offsets = [0, 64], sizes = [8, 32], strides = [1, 1]} : vector<8x128xf32> to vector<8x32xf32>
    %282 = vector.extract_strided_slice %277 {offsets = [0, 96], sizes = [8, 32], strides = [1, 1]} : vector<8x128xf32> to vector<8x32xf32>
    %283 = arith.mulf %280, %267 : vector<8x32xf32>
    %284 = arith.mulf %279, %281 : vector<8x32xf32>
    %285 = arith.addf %283, %284 : vector<8x32xf32>
    %286 = math.tanh %285 : vector<8x32xf32>
    %287 = arith.mulf %282, %286 : vector<8x32xf32>
    %288 = vector.extract_strided_slice %158 {offsets = [56, 0], sizes = [8, 128], strides = [1, 1]} : vector<64x128xf32> to vector<8x128xf32>
    %cst_43 = arith.constant dense<0.000000e+00> : vector<8x128xf32>
    %289 = tpu.matmul %287, %159, %cst_43 {dimension_numbers = #tpu.dot_dimension_numbers<[1], [0], [0], [1], [0, 0, 1, 1], [], []>} : vector<8x32xf32>, vector<32x128xf32>, vector<8x128xf32> -> vector<8x128xf32>
    %290 = arith.addf %288, %289 : vector<8x128xf32>
    %291 = arith.negf %290 : vector<8x128xf32>
    %292 = math.exp %291 : vector<8x128xf32>
    %cst_44 = arith.constant 1.000000e+00 : f32
    %293 = vector.broadcast %cst_44 : f32 to vector<8x128xf32>
    %294 = arith.addf %293, %292 : vector<8x128xf32>
    %295 = arith.divf %293, %294 : vector<8x128xf32>
    %296 = math.tanh %290 : vector<8x128xf32>
    %297 = vector.extract_strided_slice %295 {offsets = [0, 0], sizes = [8, 32], strides = [1, 1]} : vector<8x128xf32> to vector<8x32xf32>
    %298 = vector.extract_strided_slice %295 {offsets = [0, 32], sizes = [8, 32], strides = [1, 1]} : vector<8x128xf32> to vector<8x32xf32>
    %299 = vector.extract_strided_slice %296 {offsets = [0, 64], sizes = [8, 32], strides = [1, 1]} : vector<8x128xf32> to vector<8x32xf32>
    %300 = vector.extract_strided_slice %295 {offsets = [0, 96], sizes = [8, 32], strides = [1, 1]} : vector<8x128xf32> to vector<8x32xf32>
    %301 = arith.mulf %298, %285 : vector<8x32xf32>
    %302 = arith.mulf %297, %299 : vector<8x32xf32>
    %303 = arith.addf %301, %302 : vector<8x32xf32>
    %304 = math.tanh %303 : vector<8x32xf32>
    %305 = arith.mulf %300, %304 : vector<8x32xf32>
    %c128 = arith.constant 128 : index
    %c0_45 = arith.constant 0 : index
    %306 = vector.load %arg1[%c128, %c0_45] : memref<360x128xf32, #tpu.memory_space<vmem>>, vector<32x128xf32>
    %cst_46 = arith.constant dense<0.000000e+00> : vector<8x128xf32>
    %307 = tpu.matmul %305, %306, %cst_46 {dimension_numbers = #tpu.dot_dimension_numbers<[1], [0], [0], [1], [0, 0, 1, 1], [], []>} : vector<8x32xf32>, vector<32x128xf32>, vector<8x128xf32> -> vector<8x128xf32>
    %c122 = arith.constant 122 : index
    %c0_47 = arith.constant 0 : index
    %308 = vector.load %arg1[%c122, %c0_47] : memref<360x128xf32, #tpu.memory_space<vmem>>, vector<1x128xf32>
    %309 = vector.broadcast %308 : vector<1x128xf32> to vector<8x128xf32>
    %310 = arith.addf %307, %309 : vector<8x128xf32>
    %311 = vector.extract_strided_slice %310 {offsets = [0, 0], sizes = [8, 64], strides = [1, 1]} : vector<8x128xf32> to vector<8x64xf32>
    %cst_48 = arith.constant 0.000000e+00 : f32
    %312 = vector.broadcast %cst_48 : f32 to vector<8x64xf32>
    %313 = arith.cmpf oge, %311, %312 : vector<8x64xf32>
    %cst_49 = arith.constant 0.00999999977 : f32
    %314 = vector.broadcast %cst_49 : f32 to vector<8x64xf32>
    %315 = arith.mulf %314, %311 : vector<8x64xf32>
    %316 = arith.select %313, %311, %315 : vector<8x64xi1>, vector<8x64xf32>
    %317 = vector.extract_strided_slice %310 {offsets = [0, 64], sizes = [8, 64], strides = [1, 1]} : vector<8x128xf32> to vector<8x64xf32>
    %c168 = arith.constant 168 : index
    %c0_50 = arith.constant 0 : index
    %318 = vector.load %arg1[%c168, %c0_50] : memref<360x128xf32, #tpu.memory_space<vmem>>, vector<64x32xf32>
    %cst_51 = arith.constant dense<0.000000e+00> : vector<8x32xf32>
    %319 = tpu.matmul %316, %318, %cst_51 {dimension_numbers = #tpu.dot_dimension_numbers<[1], [0], [0], [1], [0, 0, 1, 1], [], []>} : vector<8x64xf32>, vector<64x32xf32>, vector<8x32xf32> -> vector<8x32xf32>
    %c123 = arith.constant 123 : index
    %c0_52 = arith.constant 0 : index
    %320 = vector.load %arg1[%c123, %c0_52] : memref<360x128xf32, #tpu.memory_space<vmem>>, vector<1x32xf32>
    %321 = vector.broadcast %320 : vector<1x32xf32> to vector<8x32xf32>
    %322 = arith.addf %319, %321 : vector<8x32xf32>
    %cst_53 = arith.constant 0.000000e+00 : f32
    %323 = vector.broadcast %cst_53 : f32 to vector<8x32xf32>
    %324 = arith.cmpf oge, %322, %323 : vector<8x32xf32>
    %cst_54 = arith.constant 0.00999999977 : f32
    %325 = vector.broadcast %cst_54 : f32 to vector<8x32xf32>
    %326 = arith.mulf %325, %322 : vector<8x32xf32>
    %327 = arith.select %324, %322, %326 : vector<8x32xi1>, vector<8x32xf32>
    %c296 = arith.constant 296 : index
    %c0_55 = arith.constant 0 : index
    %328 = vector.load %arg1[%c296, %c0_55] : memref<360x128xf32, #tpu.memory_space<vmem>>, vector<32x2xf32>
    %cst_56 = arith.constant dense<0.000000e+00> : vector<8x2xf32>
    %329 = tpu.matmul %327, %328, %cst_56 {dimension_numbers = #tpu.dot_dimension_numbers<[1], [0], [0], [1], [0, 0, 1, 1], [], []>} : vector<8x32xf32>, vector<32x2xf32>, vector<8x2xf32> -> vector<8x2xf32>
    %c125 = arith.constant 125 : index
    %c0_57 = arith.constant 0 : index
    %330 = vector.load %arg1[%c125, %c0_57] : memref<360x128xf32, #tpu.memory_space<vmem>>, vector<1x2xf32>
    %331 = vector.broadcast %330 : vector<1x2xf32> to vector<8x2xf32>
    %332 = arith.addf %329, %331 : vector<8x2xf32>
    %cst_58 = arith.constant dense<0xFF800000> : vector<8xf32>
    %333 = vector.multi_reduction <maximumf>, %332, %cst_58 [1] : vector<8x2xf32> to vector<8xf32>
    %334 = vector.shape_cast %333 : vector<8xf32> to vector<8x1xf32>
    %335 = vector.broadcast %334 : vector<8x1xf32> to vector<8x2xf32>
    %336 = arith.subf %332, %335 : vector<8x2xf32>
    %337 = math.exp %336 : vector<8x2xf32>
    %cst_59 = arith.constant dense<0.000000e+00> : vector<8xf32>
    %338 = vector.multi_reduction <add>, %337, %cst_59 [1] : vector<8x2xf32> to vector<8xf32>
    %339 = vector.shape_cast %338 : vector<8xf32> to vector<8x1xf32>
    %340 = vector.broadcast %339 : vector<8x1xf32> to vector<8x2xf32>
    %341 = arith.divf %337, %340 : vector<8x2xf32>
    %342 = tpu.iota {dimensions = array<i32: 1>} : vector<8x2xi32>
    %cst_60 = arith.constant dense<0xFF800000> : vector<8xf32>
    %343 = vector.multi_reduction <maximumf>, %332, %cst_60 [1] : vector<8x2xf32> to vector<8xf32>
    %344 = vector.shape_cast %343 : vector<8xf32> to vector<8x1xf32>
    %345 = vector.broadcast %344 : vector<8x1xf32> to vector<8x2xf32>
    %346 = arith.cmpf oge, %332, %345 : vector<8x2xf32>
    %c2_i32 = arith.constant 2 : i32
    %347 = vector.broadcast %c2_i32 : i32 to vector<8x2xi32>
    %348 = arith.select %346, %342, %347 : vector<8x2xi1>, vector<8x2xi32>
    %cst_61 = arith.constant dense<2147483647> : vector<8xi32>
    %349 = vector.multi_reduction <minsi>, %348, %cst_61 [1] : vector<8x2xi32> to vector<8xi32>
    %350 = vector.shape_cast %349 : vector<8xi32> to vector<8x1xi32>
    %351 = vector.broadcast %350 : vector<8x1xi32> to vector<8x2xi32>
    %352 = arith.cmpi eq, %342, %351 : vector<8x2xi32>
    %353 = arith.extui %352 : vector<8x2xi1> to vector<8x2xi32>
    %354 = arith.sitofp %353 : vector<8x2xi32> to vector<8x2xf32>
    %c160 = arith.constant 160 : index
    %c0_62 = arith.constant 0 : index
    %355 = vector.load %arg1[%c160, %c0_62] : memref<360x128xf32, #tpu.memory_space<vmem>>, vector<2x64xf32>
    %cst_63 = arith.constant dense<0.000000e+00> : vector<8x64xf32>
    %356 = tpu.matmul %354, %355, %cst_63 {dimension_numbers = #tpu.dot_dimension_numbers<[1], [0], [0], [1], [0, 0, 1, 1], [], []>} : vector<8x2xf32>, vector<2x64xf32>, vector<8x64xf32> -> vector<8x64xf32>
    %357 = arith.addf %317, %356 : vector<8x64xf32>
    %cst_64 = arith.constant 0.000000e+00 : f32
    %358 = vector.broadcast %cst_64 : f32 to vector<8x64xf32>
    %359 = arith.cmpf oge, %357, %358 : vector<8x64xf32>
    %cst_65 = arith.constant 0.00999999977 : f32
    %360 = vector.broadcast %cst_65 : f32 to vector<8x64xf32>
    %361 = arith.mulf %360, %357 : vector<8x64xf32>
    %362 = arith.select %359, %357, %361 : vector<8x64xi1>, vector<8x64xf32>
    %c232 = arith.constant 232 : index
    %c0_66 = arith.constant 0 : index
    %363 = vector.load %arg1[%c232, %c0_66] : memref<360x128xf32, #tpu.memory_space<vmem>>, vector<64x32xf32>
    %cst_67 = arith.constant dense<0.000000e+00> : vector<8x32xf32>
    %364 = tpu.matmul %362, %363, %cst_67 {dimension_numbers = #tpu.dot_dimension_numbers<[1], [0], [0], [1], [0, 0, 1, 1], [], []>} : vector<8x64xf32>, vector<64x32xf32>, vector<8x32xf32> -> vector<8x32xf32>
    %c124 = arith.constant 124 : index
    %c0_68 = arith.constant 0 : index
    %365 = vector.load %arg1[%c124, %c0_68] : memref<360x128xf32, #tpu.memory_space<vmem>>, vector<1x32xf32>
    %366 = vector.broadcast %365 : vector<1x32xf32> to vector<8x32xf32>
    %367 = arith.addf %364, %366 : vector<8x32xf32>
    %cst_69 = arith.constant 0.000000e+00 : f32
    %368 = vector.broadcast %cst_69 : f32 to vector<8x32xf32>
    %369 = arith.cmpf oge, %367, %368 : vector<8x32xf32>
    %cst_70 = arith.constant 0.00999999977 : f32
    %370 = vector.broadcast %cst_70 : f32 to vector<8x32xf32>
    %371 = arith.mulf %370, %367 : vector<8x32xf32>
    %372 = arith.select %369, %367, %371 : vector<8x32xi1>, vector<8x32xf32>
    %c328 = arith.constant 328 : index
    %c0_71 = arith.constant 0 : index
    %373 = vector.load %arg1[%c328, %c0_71] : memref<360x128xf32, #tpu.memory_space<vmem>>, vector<32x8xf32>
    %cst_72 = arith.constant dense<0.000000e+00> : vector<8x8xf32>
    %374 = tpu.matmul %372, %373, %cst_72 {dimension_numbers = #tpu.dot_dimension_numbers<[1], [0], [0], [1], [0, 0, 1, 1], [], []>} : vector<8x32xf32>, vector<32x8xf32>, vector<8x8xf32> -> vector<8x8xf32>
    %c126 = arith.constant 126 : index
    %c0_73 = arith.constant 0 : index
    %375 = vector.load %arg1[%c126, %c0_73] : memref<360x128xf32, #tpu.memory_space<vmem>>, vector<1x8xf32>
    %376 = vector.broadcast %375 : vector<1x8xf32> to vector<8x8xf32>
    %377 = arith.addf %374, %376 : vector<8x8xf32>
    %378 = vector.extract_strided_slice %377 {offsets = [0, 0], sizes = [8, 4], strides = [1, 1]} : vector<8x8xf32> to vector<8x4xf32>
    %379 = arith.negf %378 : vector<8x4xf32>
    %380 = math.exp %379 : vector<8x4xf32>
    %cst_74 = arith.constant 1.000000e+00 : f32
    %381 = vector.broadcast %cst_74 : f32 to vector<8x4xf32>
    %382 = arith.addf %381, %380 : vector<8x4xf32>
    %383 = arith.divf %381, %382 : vector<8x4xf32>
    %384 = vector.extract_strided_slice %377 {offsets = [0, 4], sizes = [8, 4], strides = [1, 1]} : vector<8x8xf32> to vector<8x4xf32>
    %385 = math.exp %384 : vector<8x4xf32>
    %cst_75 = arith.constant 0.000000e+00 : f32
    %386 = vector.broadcast %cst_75 : f32 to vector<8x118xf32>
    %387 = tpu.concatenate %341, %383, %385, %386 in 1 : vector<8x2xf32>, vector<8x4xf32>, vector<8x4xf32>, vector<8x118xf32> -> vector<8x128xf32>
    %c0_76 = arith.constant 0 : index
    %c0_77 = arith.constant 0 : index
    %388 = vector.load %arg2[%c0_76, %c0_77] : memref<8x128xf32, #tpu.memory_space<vmem>>, vector<8x128xf32>
    tpu.vector_store %arg2[%c0_76, %c0_77], %387 {strides = array<i32>} : memref<8x128xf32, #tpu.memory_space<vmem>>, vector<8x128xf32>,
    return
  }
}

</mosaic_0001>

<bundles_post_ra>
// kernel: sruprs_forward.1
= control target key start
LH: loop header
LB: loop body
LE: loop exit
PB: predicated region body
PF: predicated region fallthrough
CT: control target
= control target key end

     0   :  { %v3089_v1 = vmov 0.0   ;;  %vm3090_vm0 = vmmov 0   ;;  %vm27_vm1 = vcmask 195584   ;;  %s3091_s29 = smov 64   ;;  %s3092_s30 = smov 32   ;;  %vm161_vm2 = vcmask 261120   ;;  %s3693_s1 = inlined_call_operand.vmem [shape: f32[360,128], index: 1, kind: input, shape index: {}]   ;;  %s3694_s0 = inlined_call_operand.vmem [shape: f32[64,24], index: 0, kind: input, shape index: {}]   ;;  %s3695_s2 = inlined_call_operand.vmem [shape: f32[8,128], index: 2, kind: output, shape index: {}]  }
   0x1   :  { %v21_v0 = vld [vmem:[%s3693_s1 + $0x10] sm:$0xff]  ;;  %2674 = vmatprep.subr.mxu1 %v3089_v1  ;;  %v20_v3 = vld [vmem:[%s3693_s1 + $0x8] sm:$0xff]  ;;  %2682 = vmatprep.mubr.msk.f32.mxu1 %vm3090_vm0, %v3089_v1  ;;  %v19_v5 = vld [vmem:[%s3693_s1] sm:$0xff]  ;;  %vm1978_vm4 = vcmask 523264   ;;  %vm2137_vm6 = vcmask 15360   ;;  %vm2175_vm9 = vcmask 1041408  }
   0x2   :  { %v3116_v2 = vld [vmem:[%s3693_s1 + $0x30] sm:$0xff]  ;;  %2656 = vmatprep.subr.mxu0 %v21_v0  ;;  %v3127_v4 = vld [vmem:[%s3693_s1 + $0x28] sm:$0xff]  ;;  %v11_v6 = vld [vmem:[%s3694_s0] sm:$0xff]  ;;  %s3093_s16 = smov 2   ;;  %vm2447_vm13 = vcmask 48128   ;;  %vm2449_vm14 = vcmask 80896  }
   0x3   :  { %2675 = vmatpush3.msra.mxu1 %v3116_v2  ;;  %2657 = vmatpush3.msra.mxu0 %v21_v0  ;;  %v3140_v7 = vld [vmem:[%s3693_s1 + $0x20] sm:$0xff]  ;;  %v12_v8 = vld [vmem:[%s3694_s0 + $0x8] sm:$0xff]  ;;  %v3150_v9 = vld [vmem:[%s3693_s1 + $0x18] sm:$0xff] }
   0x4   :  { %2676 = vmatprep.subr.mxu1 %v3089_v1  ;;  %2658 = vmatprep.subr.mxu0 %v20_v3  ;;  %v3180_v11 = vld [vmem:[%s3693_s1 + $0x78] ss:$0 sm:$0xff]  ;;  %v13_v45 = vld [vmem:[%s3694_s0 + $0x10] sm:$0xff]  ;;  %v15_v47 = vld [vmem:[%s3694_s0 + $0x20] sm:$0xff] }
   0x5   :  { %2677 = vmatpush3.msra.mxu1 %v3127_v4  ;;  %2659 = vmatpush3.msra.mxu0 %v20_v3  ;;  %v14_v46 = vld [vmem:[%s3694_s0 + $0x18] sm:$0xff]  ;;  %v16_v48 = vld [vmem:[%s3694_s0 + $0x28] sm:$0xff]  ;;  %v17_v49 = vld [vmem:[%s3694_s0 + $0x30] sm:$0xff] }
   0x6   :  { %2678 = vmatprep.subr.mxu1 %v3089_v1  ;;  %2660 = vmatprep.subr.mxu0 %v19_v5  ;;  %v18_v50 = vld [vmem:[%s3694_s0 + $0x38] sm:$0xff] }
   0x7   :  { %2662 = vmatprep.mubr.msk.f32.mxu0 %vm27_vm1, %v11_v6  ;;  %2661 = vmatpush3.msra.mxu0 %v19_v5 }
   0x8   :  { %2679 = vmatpush3.msra.mxu1 %v3140_v7  ;;  %2663 = vmatmul.mubr.msk.f32.vlgmr.msra.gmra.mxu0 %vm27_vm1, %v12_v8 }
   0x9   :  { %2680 = vmatprep.subr.mxu1 %v3089_v1  ;;  %2696 = vmatprep.subr.mxu0 %v3089_v1 }
   0xa   :  { %2681 = vmatpush3.msra.mxu1 %v3150_v9  ;;  %2697 = vmatpush3.msra.mxu0 %v3116_v2 }
   0xb   :  { %2683 = vmatmul.mubr.f32.vlgmr.msra.gmra.mxu1 %v3089_v1  ;;  %2685 = vmatprep.subr.mxu1 %v3089_v1 }
   0xc   :  { %2686 = vmatpush3.msra.mxu1 %v3116_v2  ;;  %2693 = vmatprep.mubr.msk.f32.mxu1 %vm3090_vm0, %v3089_v1 }
   0xd   :  { %2687 = vmatprep.subr.mxu1 %v3089_v1  ;;  %2698 = vmatprep.subr.mxu0 %v3089_v1 }
   0xe   :  { %2688 = vmatpush3.msra.mxu1 %v3127_v4  ;;  %2699 = vmatpush3.msra.mxu0 %v3127_v4 }
   0xf   :  { %2689 = vmatprep.subr.mxu1 %v3089_v1  ;;  %2700 = vmatprep.subr.mxu0 %v3089_v1 }
  0x10   :  { %2690 = vmatpush3.msra.mxu1 %v3140_v7  ;;  %2701 = vmatpush3.msra.mxu0 %v3140_v7 }
  0x11   :  { %2691 = vmatprep.subr.mxu1 %v3089_v1  ;;  %2702 = vmatprep.subr.mxu0 %v3089_v1 }
  0x12   :  { %2692 = vmatpush3.msra.mxu1 %v3150_v9  ;;  %2703 = vmatpush3.msra.mxu0 %v3150_v9 }
  0x13   :  { %2707 = vmatprep.subr.mxu1 %v3089_v1  ;;  %2718 = vmatprep.subr.mxu0 %v3089_v1 }
  0x14   :  { %2665 = vmatprep.mubr.msk.f32.mxu0 %vm27_vm1, %v13_v45 }
  0x15   :  { %2666 = vmatmul.mubr.msk.f32.gmra.mxu0 %vm27_vm1, %v14_v46 }
  0x16   :  { %2668 = vmatprep.mubr.msk.f32.mxu0 %vm27_vm1, %v15_v47 }
  0x19   :  { %2669 = vmatmul.mubr.msk.f32.gmra.mxu0 %vm27_vm1, %v16_v48 }
  0x1a   :  { %2671 = vmatprep.mubr.msk.f32.mxu0 %vm27_vm1, %v17_v49 }
  0x1d   :  { %2672 = vmatmul.mubr.msk.f32.gmra.mxu0 %vm27_vm1, %v18_v50 }
  0x1e   :  { %2704 = vmatprep.mubr.msk.f32.mxu0 %vm3090_vm0, %v3089_v1 }
  0xc8   :  { %v2664_v10 = vpop.f32.mrf.mxu0 }
  0xc9   :  { %v124_v31 = vadd.f32 %v2664_v10, %v3180_v11 }
  0xca   :  { %v118_v12 = vpop.f32.mrf.mxu0 }
  0xcb   :  { %v231_v13 = vpop.f32.mrf.mxu1  ;;  %v119_v14 = vadd.f32 %v3180_v11, %v118_v12 }
  0xcd   :  { %v2684_v15 = vpop.f32.mrf.mxu1  ;;  %v235_v16 = vadd.f32 %v231_v13, %v119_v14 }
  0xcf   :  { %2951 = vtanh.f32 %v235_v16  ;;  %v2465_v18 = vmul.f32 -1.442695, %v235_v16 }
  0xd1   :  { %2953 = vpow2.f32 %v2465_v18 }
  0xd5   :  { %v2667_v55 = vpop.f32.mrf.mxu0 }
  0xd7   :  { %v128_v56 = vpop.f32.mrf.mxu0 }
  0xd8   :  { %v129_v61 = vadd.f32 %v3180_v11, %v128_v56 }
  0xd9   :  { %v3246_v57 = vpop.f32.mrf.mxu0 }
  0xdb   :  { %v3248_v58 = vpop.f32.mrf.mxu0 }
  0xdc   :  { %v2952_v17 = vpop.eup %2951 }
  0xdd   :  { %245 = vrot.lane.b32.xlu0 %v2952_v17, %s3091_s29  ;;  %v3250_v59 = vpop.f32.mrf.mxu0 }
  0xde   :  { %v2954_v19 = vpop.eup %2953 }
  0xdf   :  { %v239_v20 = vadd.f32 1.0, %v2954_v19  ;;  %v3252_v60 = vpop.f32.mrf.mxu0 }
  0xe1   :  { %2955 = vrcp.f32 %v239_v20 }
  0xee   :  { %v2956_v21 = vpop.eup %2955 }
  0xef   :  { %v243_v24 = vmul.f32 0.0, %v2956_v21 }
 0x14f   :  { %v246_v22 = vpop.permute.xlu0 %245 }
 0x150   :  { %v248_v23 = vmul.f32 %v2956_v21, %v246_v22 }
 0x152   :  { %250 = vrot.lane.b32.xlu0 %v248_v23, %s3092_s30 }
 0x1c4   :  { %v251_v25 = vpop.permute.xlu0 %250 }
 0x1c5   :  { %v253_v26 = vadd.f32 %v251_v25, %v243_v24 }
 0x1c7   :  { %2957 = vtanh.f32 %v253_v26 }
 0x1d4   :  { %v2958_v27 = vpop.eup %2957 }
 0x1d5   :  { %256 = vrot.lane.b32.xlu1 %v2958_v27, %s3091_s29 }
 0x247   :  { %v257_v28 = vpop.permute.xlu1 %256 }
 0x248   :  { %v259_v29 = vmul.f32 %v2956_v21, %v257_v28  ;;  %v134_v21 = vadd.f32 %v2667_v55, %v3180_v11 }
 0x24a   :  { %261 = vrot.lane.b32.xlu1 %v259_v29, %s3092_s30 }
 0x2bc   :  { %v3187_v30 = vpop.permute.xlu1 %261 }
 0x2bd   :  { %2694 = vmatmul.mubr.msk.f32.vlgmr.msra.gmra.mxu1 %vm161_vm2, %v3187_v30 }
 0x2be   :  { %2708 = vmatpush3.msra.mxu1 %v3116_v2  ;;  %2715 = vmatprep.mubr.msk.f32.mxu1 %vm3090_vm0, %v3089_v1 }
 0x2bf   :  { %2709 = vmatprep.subr.mxu1 %v3089_v1 }
 0x2c0   :  { %2710 = vmatpush3.msra.mxu1 %v3127_v4 }
 0x2c1   :  { %2711 = vmatprep.subr.mxu1 %v3089_v1 }
 0x2c2   :  { %2712 = vmatpush3.msra.mxu1 %v3140_v7 }
 0x2c3   :  { %2713 = vmatprep.subr.mxu1 %v3089_v1 }
 0x2c4   :  { %2714 = vmatpush3.msra.mxu1 %v3150_v9 }
 0x2c5   :  { %2729 = vmatprep.subr.mxu1 %v3089_v1 }
 0x37d   :  { %v331_v32 = vpop.f32.mrf.mxu1 }
 0x37e   :  { %v335_v33 = vadd.f32 %v331_v32, %v124_v31 }
 0x37f   :  { %v2695_v34 = vpop.f32.mrf.mxu1 }
 0x380   :  { %2959 = vtanh.f32 %v335_v33  ;;  %v2467_v36 = vmul.f32 -1.442695, %v335_v33 }
 0x382   :  { %2961 = vpow2.f32 %v2467_v36 }
 0x38d   :  { %v2960_v35 = vpop.eup %2959 }
 0x38e   :  { %345 = vrot.lane.b32.xlu0 %v2960_v35, %s3091_s29 }
 0x38f   :  { %v2962_v37 = vpop.eup %2961 }
 0x390   :  { %v339_v38 = vadd.f32 1.0, %v2962_v37 }
 0x392   :  { %2963 = vrcp.f32 %v339_v38 }
 0x39f   :  { %v2964_v39 = vpop.eup %2963 }
 0x3a0   :  { %v343_v42 = vmul.f32 %v2964_v39, %v253_v26 }
 0x400   :  { %v346_v40 = vpop.permute.xlu0 %345 }
 0x401   :  { %v348_v41 = vmul.f32 %v2964_v39, %v346_v40  ;;  %v139_v40 = vadd.f32 %v3180_v11, %v3248_v58 }
 0x403   :  { %350 = vrot.lane.b32.xlu1 %v348_v41, %s3092_s30 }
 0x475   :  { %v351_v43 = vpop.permute.xlu1 %350 }
 0x476   :  { %v353_v44 = vadd.f32 %v351_v43, %v343_v42 }
 0x478   :  { %2965 = vtanh.f32 %v353_v44 }
 0x485   :  { %v2966_v51 = vpop.eup %2965 }
 0x486   :  { %356 = vrot.lane.b32.xlu0 %v2966_v51, %s3091_s29 }
 0x4f8   :  { %v357_v52 = vpop.permute.xlu0 %356 }
 0x4f9   :  { %v359_v53 = vmul.f32 %v2964_v39, %v357_v52 }
 0x4fb   :  { %361 = vrot.lane.b32.xlu1 %v359_v53, %s3092_s30 }
 0x56d   :  { %v3232_v54 = vpop.permute.xlu1 %361 }
 0x56e   :  { %2705 = vmatmul.mubr.msk.f32.vlgmr.msra.gmra.mxu0 %vm161_vm2, %v3232_v54 }
 0x56f   :  { %2719 = vmatpush3.msra.mxu0 %v3116_v2  ;;  %2726 = vmatprep.mubr.msk.f32.mxu0 %vm3090_vm0, %v3089_v1 }
 0x570   :  { %2720 = vmatprep.subr.mxu0 %v3089_v1 }
 0x571   :  { %2721 = vmatpush3.msra.mxu0 %v3127_v4 }
 0x572   :  { %2722 = vmatprep.subr.mxu0 %v3089_v1 }
 0x573   :  { %2723 = vmatpush3.msra.mxu0 %v3140_v7 }
 0x574   :  { %2724 = vmatprep.subr.mxu0 %v3089_v1 }
 0x575   :  { %2725 = vmatpush3.msra.mxu0 %v3150_v9 }
 0x576   :  { %2740 = vmatprep.subr.mxu0 %v3089_v1 }
 0x62e   :  { %v431_v62 = vpop.f32.mrf.mxu0 }
 0x62f   :  { %v435_v63 = vadd.f32 %v431_v62, %v129_v61 }
 0x630   :  { %v2706_v0 = vpop.f32.mrf.mxu0 }
 0x631   :  { %2967 = vtanh.f32 %v435_v63  ;;  %v2469_v5 = vmul.f32 -1.442695, %v435_v63 }
 0x633   :  { %2969 = vpow2.f32 %v2469_v5 }
 0x63e   :  { %v2968_v3 = vpop.eup %2967 }
 0x63f   :  { %445 = vrot.lane.b32.xlu0 %v2968_v3, %s3091_s29 }
 0x640   :  { %v2970_v6 = vpop.eup %2969 }
 0x641   :  { %v439_v8 = vadd.f32 1.0, %v2970_v6 }
 0x643   :  { %2971 = vrcp.f32 %v439_v8 }
 0x650   :  { %v2972_v10 = vpop.eup %2971 }
 0x651   :  { %v443_v14 = vmul.f32 %v2972_v10, %v353_v44 }
 0x6b1   :  { %v446_v12 = vpop.permute.xlu0 %445 }
 0x6b2   :  { %v448_v13 = vmul.f32 %v2972_v10, %v446_v12 }
 0x6b4   :  { %450 = vrot.lane.b32.xlu1 %v448_v13, %s3092_s30  ;;  %v963_v13 = vld [vmem:[%s3693_s1 + $0x50] sm:$0xff] }
 0x726   :  { %v451_v15 = vpop.permute.xlu1 %450 }
 0x727   :  { %v453_v16 = vadd.f32 %v451_v15, %v443_v14 }
 0x729   :  { %2973 = vtanh.f32 %v453_v16 }
 0x736   :  { %v2974_v17 = vpop.eup %2973 }
 0x737   :  { %456 = vrot.lane.b32.xlu0 %v2974_v17, %s3091_s29 }
 0x7a9   :  { %v457_v18 = vpop.permute.xlu0 %456 }
 0x7aa   :  { %v459_v19 = vmul.f32 %v2972_v10, %v457_v18  ;;  %v962_v18 = vld [vmem:[%s3693_s1 + $0x48] sm:$0xff] }
 0x7ac   :  { %461 = vrot.lane.b32.xlu1 %v459_v19, %s3092_s30  ;;  %v961_v19 = vld [vmem:[%s3693_s1 + $0x40] sm:$0xff] }
 0x81e   :  { %v3259_v20 = vpop.permute.xlu1 %461 }
 0x81f   :  { %2716 = vmatmul.mubr.msk.f32.vlgmr.msra.gmra.mxu1 %vm161_vm2, %v3259_v20 }
 0x820   :  { %2730 = vmatpush3.msra.mxu1 %v3116_v2  ;;  %2737 = vmatprep.mubr.msk.f32.mxu1 %vm3090_vm0, %v3089_v1 }
 0x821   :  { %2731 = vmatprep.subr.mxu1 %v3089_v1 }
 0x822   :  { %2732 = vmatpush3.msra.mxu1 %v3127_v4 }
 0x823   :  { %2733 = vmatprep.subr.mxu1 %v3089_v1 }
 0x824   :  { %2734 = vmatpush3.msra.mxu1 %v3140_v7 }
 0x825   :  { %2735 = vmatprep.subr.mxu1 %v3089_v1 }
 0x826   :  { %2736 = vmatpush3.msra.mxu1 %v3150_v9 }
 0x827   :  { %2751 = vmatprep.subr.mxu1 %v3089_v1 }
 0x8df   :  { %v531_v22 = vpop.f32.mrf.mxu1 }
 0x8e0   :  { %v535_v23 = vadd.f32 %v531_v22, %v134_v21  ;;  %v960_v21 = vld [vmem:[%s3693_s1 + $0x38] sm:$0xff] }
 0x8e1   :  { %v2717_v24 = vpop.f32.mrf.mxu1 }
 0x8e2   :  { %2975 = vtanh.f32 %v535_v23  ;;  %v2471_v26 = vmul.f32 -1.442695, %v535_v23 }
 0x8e4   :  { %2977 = vpow2.f32 %v2471_v26 }
 0x8ef   :  { %v2976_v25 = vpop.eup %2975 }
 0x8f0   :  { %545 = vrot.lane.b32.xlu0 %v2976_v25, %s3091_s29 }
 0x8f1   :  { %v2978_v27 = vpop.eup %2977 }
 0x8f2   :  { %v539_v28 = vadd.f32 1.0, %v2978_v27 }
 0x8f4   :  { %2979 = vrcp.f32 %v539_v28 }
 0x901   :  { %v2980_v29 = vpop.eup %2979 }
 0x902   :  { %v543_v33 = vmul.f32 %v2980_v29, %v453_v16 }
 0x962   :  { %v546_v31 = vpop.permute.xlu0 %545 }
 0x963   :  { %v548_v32 = vmul.f32 %v2980_v29, %v546_v31 }
 0x965   :  { %550 = vrot.lane.b32.xlu1 %v548_v32, %s3092_s30 }
 0x9d7   :  { %v551_v34 = vpop.permute.xlu1 %550 }
 0x9d8   :  { %v553_v35 = vadd.f32 %v551_v34, %v543_v33  ;;  %v3349_v34 = vld [vmem:[%s3693_s1 + $0x70] sm:$0xff] }
 0x9da   :  { %2981 = vtanh.f32 %v553_v35 }
 0x9e7   :  { %v2982_v36 = vpop.eup %2981 }
 0x9e8   :  { %556 = vrot.lane.b32.xlu0 %v2982_v36, %s3091_s29  ;;  %v3362_v36 = vld [vmem:[%s3693_s1 + $0x60] sm:$0xff] }
 0xa5a   :  { %v557_v37 = vpop.permute.xlu0 %556 }
 0xa5b   :  { %v559_v38 = vmul.f32 %v2980_v29, %v557_v37  ;;  %v3369_v37 = vld [vmem:[%s3693_s1 + $0x58] sm:$0xff] }
 0xa5d   :  { %561 = vrot.lane.b32.xlu1 %v559_v38, %s3092_s30 }
 0xacf   :  { %v3278_v39 = vpop.permute.xlu1 %561 }
 0xad0   :  { %2727 = vmatmul.mubr.msk.f32.vlgmr.msra.gmra.mxu0 %vm161_vm2, %v3278_v39 }
 0xad1   :  { %2741 = vmatpush3.msra.mxu0 %v3116_v2  ;;  %2748 = vmatprep.mubr.msk.f32.mxu0 %vm3090_vm0, %v3089_v1 }
 0xad2   :  { %2742 = vmatprep.subr.mxu0 %v3089_v1 }
 0xad3   :  { %2743 = vmatpush3.msra.mxu0 %v3127_v4 }
 0xad4   :  { %2744 = vmatprep.subr.mxu0 %v3089_v1 }
 0xad5   :  { %2745 = vmatpush3.msra.mxu0 %v3140_v7 }
 0xad6   :  { %2746 = vmatprep.subr.mxu0 %v3089_v1 }
 0xad7   :  { %2747 = vmatpush3.msra.mxu0 %v3150_v9 }
 0xad8   :  { %2762 = vmatprep.subr.mxu0 %v963_v13 }
 0xb90   :  { %v631_v41 = vpop.f32.mrf.mxu0 }
 0xb91   :  { %v635_v42 = vadd.f32 %v631_v41, %v139_v40  ;;  %v154_v41 = vadd.f32 %v3250_v59, %v3180_v11 }
 0xb92   :  { %v2728_v43 = vpop.f32.mrf.mxu0 }
 0xb93   :  { %2983 = vtanh.f32 %v635_v42  ;;  %v2473_v45 = vmul.f32 -1.442695, %v635_v42 }
 0xb95   :  { %2985 = vpow2.f32 %v2473_v45 }
 0xba0   :  { %v2984_v44 = vpop.eup %2983 }
 0xba1   :  { %645 = vrot.lane.b32.xlu0 %v2984_v44, %s3091_s29 }
 0xba2   :  { %v2986_v46 = vpop.eup %2985 }
 0xba3   :  { %v639_v47 = vadd.f32 1.0, %v2986_v46 }
 0xba5   :  { %2987 = vrcp.f32 %v639_v47  ;;  %v3405_v47 = vld [vmem:[%s3693_s1 + $0x79] ss:$0 sm:$0xff] }
 0xbb2   :  { %v2988_v48 = vpop.eup %2987 }
 0xbb3   :  { %v643_v51 = vmul.f32 %v2988_v48, %v553_v35  ;;  %v3355_v35 = vld [vmem:[%s3693_s1 + $0x68] sm:$0xff] }
 0xc13   :  { %v646_v49 = vpop.permute.xlu0 %645 }
 0xc14   :  { %v648_v50 = vmul.f32 %v2988_v48, %v646_v49 }
 0xc16   :  { %650 = vrot.lane.b32.xlu1 %v648_v50, %s3092_s30 }
 0xc88   :  { %v651_v52 = vpop.permute.xlu1 %650 }
 0xc89   :  { %v653_v53 = vadd.f32 %v651_v52, %v643_v51 }
 0xc8b   :  { %2989 = vtanh.f32 %v653_v53 }
 0xc98   :  { %v2990_v55 = vpop.eup %2989 }
 0xc99   :  { %656 = vrot.lane.b32.xlu0 %v2990_v55, %s3091_s29 }
 0xd0b   :  { %v657_v56 = vpop.permute.xlu0 %656 }
 0xd0c   :  { %v659_v58 = vmul.f32 %v2988_v48, %v657_v56 }
 0xd0e   :  { %661 = vrot.lane.b32.xlu1 %v659_v58, %s3092_s30 }
 0xd80   :  { %v662_v61 = vpop.permute.xlu1 %661 }
 0xd81   :  { %2738 = vmatmul.mubr.msk.f32.vlgmr.msra.gmra.mxu1 %vm161_vm2, %v662_v61 }
 0xd82   :  { %2752 = vmatpush3.msra.mxu1 %v3116_v2  ;;  %2759 = vmatprep.mubr.msk.f32.mxu1 %vm3090_vm0, %v3089_v1  ;;  %v144_v2 = vadd.f32 %v3246_v57, %v3180_v11 }
 0xd83   :  { %2753 = vmatprep.subr.mxu1 %v3089_v1 }
 0xd84   :  { %2754 = vmatpush3.msra.mxu1 %v3127_v4 }
 0xd85   :  { %2755 = vmatprep.subr.mxu1 %v3089_v1 }
 0xd86   :  { %2756 = vmatpush3.msra.mxu1 %v3140_v7 }
 0xd87   :  { %2757 = vmatprep.subr.mxu1 %v3089_v1 }
 0xd88   :  { %2758 = vmatpush3.msra.mxu1 %v3150_v9 }
 0xd89   :  { %2782 = vmatprep.subr.mxu1 %v3089_v1 }
 0xe41   :  { %v731_v62 = vpop.f32.mrf.mxu1 }
 0xe42   :  { %v735_v63 = vadd.f32 %v731_v62, %v144_v2 }
 0xe43   :  { %v2739_v0 = vpop.f32.mrf.mxu1 }
 0xe44   :  { %2991 = vtanh.f32 %v735_v63  ;;  %v2475_v4 = vmul.f32 -1.442695, %v735_v63 }
 0xe46   :  { %2993 = vpow2.f32 %v2475_v4 }
 0xe51   :  { %v2992_v3 = vpop.eup %2991 }
 0xe52   :  { %745 = vrot.lane.b32.xlu0 %v2992_v3, %s3091_s29 }
 0xe53   :  { %v2994_v5 = vpop.eup %2993 }
 0xe54   :  { %v739_v7 = vadd.f32 1.0, %v2994_v5 }
 0xe56   :  { %2995 = vrcp.f32 %v739_v7 }
 0xe63   :  { %v2996_v6 = vpop.eup %2995 }
 0xe64   :  { %v743_v10 = vmul.f32 %v2996_v6, %v653_v53 }
 0xec4   :  { %v746_v8 = vpop.permute.xlu0 %745 }
 0xec5   :  { %v748_v9 = vmul.f32 %v2996_v6, %v746_v8 }
 0xec7   :  { %750 = vrot.lane.b32.xlu1 %v748_v9, %s3092_s30 }
 0xf39   :  { %v751_v12 = vpop.permute.xlu1 %750 }
 0xf3a   :  { %v753_v57 = vadd.f32 %v751_v12, %v743_v10 }
 0xf3c   :  { %2997 = vtanh.f32 %v753_v57 }
 0xf49   :  { %v2998_v14 = vpop.eup %2997 }
 0xf4a   :  { %756 = vrot.lane.b32.xlu0 %v2998_v14, %s3091_s29 }
 0xfbc   :  { %v757_v15 = vpop.permute.xlu0 %756 }
 0xfbd   :  { %v759_v16 = vmul.f32 %v2996_v6, %v757_v15 }
 0xfbf   :  { %761 = vrot.lane.b32.xlu1 %v759_v16, %s3092_s30 }
0x1031   :  { %v762_v17 = vpop.permute.xlu1 %761 }
0x1032   :  { %2749 = vmatmul.mubr.msk.f32.vlgmr.msra.gmra.mxu0 %vm161_vm2, %v762_v17 }
0x1033   :  { %2763 = vmatpush3.msra.mxu0 %v963_v13  ;;  %2770 = vmatprep.mubr.msk.f32.mxu0 %vm161_vm2, %v3187_v30  ;;  %v149_v30 = vadd.f32 %v3180_v11, %v3252_v60 }
0x1034   :  { %2764 = vmatprep.subr.mxu0 %v962_v18 }
0x1035   :  { %2765 = vmatpush3.msra.mxu0 %v962_v18 }
0x1036   :  { %2766 = vmatprep.subr.mxu0 %v961_v19 }
0x1037   :  { %2767 = vmatpush3.msra.mxu0 %v961_v19 }
0x1038   :  { %2768 = vmatprep.subr.mxu0 %v960_v21 }
0x1039   :  { %2769 = vmatpush3.msra.mxu0 %v960_v21 }
0x103a   :  { %2771 = vmatmul.mubr.msk.f32.vlgmr.msra.gmra.mxu0 %vm161_vm2, %v3232_v54  ;;  %2804 = vmatprep.subr.mxu0 %v3089_v1 }
0x103b   :  { %2773 = vmatprep.mubr.msk.f32.mxu0 %vm161_vm2, %v3259_v20  ;;  %2805 = vmatpush3.msra.mxu0 %v3349_v34 }
0x103c   :  { %2806 = vmatprep.subr.mxu0 %v3089_v1 }
0x103d   :  { %2807 = vmatpush3.msra.mxu0 %v3355_v35 }
0x103e   :  { %2774 = vmatmul.mubr.msk.f32.gmra.mxu0 %vm161_vm2, %v3278_v39  ;;  %2808 = vmatprep.subr.mxu0 %v3089_v1 }
0x103f   :  { %2776 = vmatprep.mubr.msk.f32.mxu0 %vm161_vm2, %v662_v61  ;;  %2809 = vmatpush3.msra.mxu0 %v3362_v36 }
0x1040   :  { %2810 = vmatprep.subr.mxu0 %v3089_v1 }
0x1041   :  { %2811 = vmatpush3.msra.mxu0 %v3369_v37 }
0x1042   :  { %2777 = vmatmul.mubr.msk.f32.gmra.mxu0 %vm161_vm2, %v762_v17  ;;  %2826 = vmatprep.subr.mxu0 %v3089_v1 }
0x10f2   :  { %v831_v22 = vpop.f32.mrf.mxu0 }
0x10f3   :  { %v835_v23 = vadd.f32 %v831_v22, %v149_v30 }
0x10f4   :  { %v2750_v24 = vpop.f32.mrf.mxu0 }
0x10f5   :  { %2999 = vtanh.f32 %v835_v23  ;;  %v2477_v25 = vmul.f32 -1.442695, %v835_v23 }
0x10f7   :  { %3001 = vpow2.f32 %v2477_v25 }
0x10fa   :  { %v3400_v42 = vpop.f32.mrf.mxu0 }
0x10fb   :  { %v1046_v18 = vadd.f32 %v3400_v42, %v3405_v47 }
0x10fc   :  { %v1040_v46 = vpop.f32.mrf.mxu0 }
0x10fd   :  { %v1041_v48 = vadd.f32 %v3405_v47, %v1040_v46 }
0x1102   :  { %v3000_v54 = vpop.eup %2999 }
0x1103   :  { %845 = vrot.lane.b32.xlu0 %v3000_v54, %s3091_s29 }
0x1104   :  { %v3002_v20 = vpop.eup %3001 }
0x1105   :  { %v839_v26 = vadd.f32 1.0, %v3002_v20 }
0x1107   :  { %3003 = vrcp.f32 %v839_v26 }
0x1114   :  { %v3004_v27 = vpop.eup %3003 }
0x1115   :  { %v843_v31 = vmul.f32 %v3004_v27, %v753_v57 }
0x1175   :  { %v846_v28 = vpop.permute.xlu0 %845 }
0x1176   :  { %v848_v29 = vmul.f32 %v3004_v27, %v846_v28 }
0x1178   :  { %850 = vrot.lane.b32.xlu1 %v848_v29, %s3092_s30 }
0x11ea   :  { %v851_v32 = vpop.permute.xlu1 %850 }
0x11eb   :  { %v3342_v60 = vadd.f32 %v851_v32, %v843_v31 }
0x11ed   :  { %3005 = vtanh.f32 %v3342_v60 }
0x11fa   :  { %v3006_v33 = vpop.eup %3005 }
0x11fb   :  { %856 = vrot.lane.b32.xlu0 %v3006_v33, %s3091_s29 }
0x126d   :  { %v857_v38 = vpop.permute.xlu0 %856 }
0x126e   :  { %v859_v39 = vmul.f32 %v3004_v27, %v857_v38 }
0x1270   :  { %861 = vrot.lane.b32.xlu1 %v859_v39, %s3092_s30  ;;  %v2775_v39 = vpop.f32.mrf.mxu0 }
0x12e2   :  { %v862_v40 = vpop.permute.xlu1 %861 }
0x12e3   :  { %2760 = vmatmul.mubr.msk.f32.vlgmr.msra.gmra.mxu1 %vm161_vm2, %v862_v40  ;;  %2779 = vmatprep.mubr.msk.f32.mxu0 %vm161_vm2, %v862_v40  ;;  %v1050_v40 = vpop.f32.mrf.mxu0 }
0x12e4   :  { %2783 = vmatpush3.msra.mxu1 %v3349_v34  ;;  %2790 = vmatprep.mubr.msk.f32.mxu1 %vm3090_vm0, %v3089_v1 }
0x12e5   :  { %2784 = vmatprep.subr.mxu1 %v3089_v1 }
0x12e6   :  { %2785 = vmatpush3.msra.mxu1 %v3355_v35 }
0x12e7   :  { %2786 = vmatprep.subr.mxu1 %v3089_v1 }
0x12e8   :  { %2787 = vmatpush3.msra.mxu1 %v3362_v36 }
0x12e9   :  { %2788 = vmatprep.subr.mxu1 %v3089_v1 }
0x12ea   :  { %2789 = vmatpush3.msra.mxu1 %v3369_v37 }
0x12eb   :  { %2791 = vmatmul.mubr.f32.vlgmr.msra.gmra.mxu1 %v3089_v1  ;;  %2793 = vmatprep.subr.mxu1 %v3089_v1 }
0x12ec   :  { %2794 = vmatpush3.msra.mxu1 %v3349_v34  ;;  %2801 = vmatprep.mubr.msk.f32.mxu1 %vm3090_vm0, %v3089_v1 }
0x12ed   :  { %2795 = vmatprep.subr.mxu1 %v3089_v1 }
0x12ee   :  { %2796 = vmatpush3.msra.mxu1 %v3355_v35 }
0x12ef   :  { %2797 = vmatprep.subr.mxu1 %v3089_v1 }
0x12f0   :  { %2798 = vmatpush3.msra.mxu1 %v3362_v36 }
0x12f1   :  { %2799 = vmatprep.subr.mxu1 %v3089_v1 }
0x12f2   :  { %2800 = vmatpush3.msra.mxu1 %v3369_v37 }
0x12f3   :  { %2815 = vmatprep.subr.mxu1 %v3089_v1 }
0x13a3   :  { %v931_v43 = vpop.f32.mrf.mxu1 }
0x13a4   :  { %v935_v44 = vadd.f32 %v931_v43, %v154_v41  ;;  %v3448_v41 = vpop.f32.mrf.mxu0 }
0x13a5   :  { %v2761_v45 = vpop.f32.mrf.mxu1 }
0x13a6   :  { %v2479_v3 = vmul.f32 -1.442695, %v935_v44  ;;  %v3450_v42 = vpop.f32.mrf.mxu0  ;;  %v1051_v45 = vadd.f32 %v3405_v47, %v1050_v40 }
0x13ab   :  { %v1149_v49 = vpop.f32.mrf.mxu1 }
0x13ac   :  { %v1153_v50 = vadd.f32 %v1149_v49, %v1041_v48 }
0x13ad   :  { %v2792_v51 = vpop.f32.mrf.mxu1 }
0x13ae   :  { %3007 = vtanh.f32 %v1153_v50  ;;  %v2489_v11 = vmul.f32 -1.442695, %v1153_v50 }
0x13b0   :  { %3009 = vpow2.f32 %v2489_v11 }
0x13bb   :  { %v3008_v52 = vpop.eup %3007 }
0x13bc   :  { %1163 = vrot.lane.b32.xlu0 %v3008_v52, %s3091_s29 }
0x13bd   :  { %v3010_v59 = vpop.eup %3009 }
0x13be   :  { %v1157_v53 = vadd.f32 1.0, %v3010_v59 }
0x13c0   :  { %3011 = vrcp.f32 %v1157_v53 }
0x13cd   :  { %v3012_v55 = vpop.eup %3011 }
0x13ce   :  { %v1161_v61 = vmul.f32 0.0, %v3012_v55 }
0x142e   :  { %v1164_v56 = vpop.permute.xlu0 %1163 }
0x142f   :  { %v1166_v58 = vmul.f32 %v3012_v55, %v1164_v56 }
0x1431   :  { %1168 = vrot.lane.b32.xlu1 %v1166_v58, %s3092_s30 }
0x14a3   :  { %v1169_v2 = vpop.permute.xlu1 %1168 }
0x14a4   :  { %v1171_v62 = vadd.f32 %v1169_v2, %v1161_v61 }
0x14a6   :  { %3013 = vtanh.f32 %v1171_v62 }
0x14a7   :  { %3015 = vtanh.f32 %v935_v44 }
0x14a8   :  { %3017 = vpow2.f32 %v2479_v3  ;;  %v1056_v3 = vadd.f32 %v2775_v39, %v3405_v47 }
0x14b3   :  { %v3014_v63 = vpop.eup %3013 }
0x14b4   :  { %1174 = vrot.lane.b32.xlu0 %v3014_v63, %s3091_s29  ;;  %v3016_v0 = vpop.eup %3015 }
0x14b5   :  { %v3018_v4 = vpop.eup %3017 }
0x14b6   :  { %v939_v5 = vadd.f32 1.0, %v3018_v4 }
0x14b8   :  { %945 = vrot.lane.b32.xlu0 %v3016_v0, %s3091_s29  ;;  %3019 = vrcp.f32 %v939_v5 }
0x14c5   :  { %v3020_v8 = vpop.eup %3019 }
0x14c6   :  { %v943_v57 = vmul.f32 %v3020_v8, %v3342_v60 }
0x1526   :  { %v1175_v7 = vpop.permute.xlu0 %1174 }
0x1527   :  { %v1177_v6 = vmul.f32 %v3012_v55, %v1175_v7 }
0x1529   :  { %1179 = vrot.lane.b32.xlu1 %v1177_v6, %s3092_s30 }
0x152a   :  { %v946_v9 = vpop.permute.xlu0 %945 }
0x152b   :  { %v948_v10 = vmul.f32 %v3020_v8, %v946_v9 }
0x152d   :  { %950 = vrot.lane.b32.xlu0 %v948_v10, %s3092_s30 }
0x159b   :  { %v1180_v12 = vpop.permute.xlu1 %1179 }
0x159c   :  { %2802 = vmatmul.mubr.msk.f32.vlgmr.msra.gmra.mxu1 %vm161_vm2, %v1180_v12 }
0x159d   :  { %2816 = vmatpush3.msra.mxu1 %v3349_v34  ;;  %2823 = vmatprep.mubr.msk.f32.mxu1 %vm3090_vm0, %v3089_v1 }
0x159e   :  { %2817 = vmatprep.subr.mxu1 %v3089_v1 }
0x159f   :  { %v951_v13 = vpop.permute.xlu0 %950  ;;  %2818 = vmatpush3.msra.mxu1 %v3355_v35 }
0x15a0   :  { %v953_v14 = vadd.f32 %v951_v13, %v943_v57  ;;  %2819 = vmatprep.subr.mxu1 %v3089_v1 }
0x15a1   :  { %2820 = vmatpush3.msra.mxu1 %v3362_v36 }
0x15a2   :  { %3021 = vtanh.f32 %v953_v14  ;;  %2821 = vmatprep.subr.mxu1 %v3089_v1 }
0x15a3   :  { %2822 = vmatpush3.msra.mxu1 %v3369_v37 }
0x15a4   :  { %2837 = vmatprep.subr.mxu1 %v3089_v1 }
0x15af   :  { %v3022_v15 = vpop.eup %3021 }
0x15b0   :  { %956 = vrot.lane.b32.xlu0 %v3022_v15, %s3091_s29 }
0x1622   :  { %v957_v16 = vpop.permute.xlu0 %956 }
0x1623   :  { %v959_v17 = vmul.f32 %v3020_v8, %v957_v16 }
0x1625   :  { %970 = vrot.lane.b32.xlu0 %v959_v17, %s3092_s30 }
0x165c   :  { %v1249_v19 = vpop.f32.mrf.mxu1 }
0x165d   :  { %v1253_v21 = vadd.f32 %v1249_v19, %v1046_v18 }
0x165e   :  { %v2803_v30 = vpop.f32.mrf.mxu1 }
0x165f   :  { %3023 = vtanh.f32 %v1253_v21  ;;  %v2491_v24 = vmul.f32 -1.442695, %v1253_v21  ;;  %v1061_v30 = vadd.f32 %v3405_v47, %v3450_v42 }
0x1661   :  { %3025 = vpow2.f32 %v2491_v24 }
0x166c   :  { %v3024_v22 = vpop.eup %3023 }
0x166d   :  { %1263 = vrot.lane.b32.xlu1 %v3024_v22, %s3091_s29 }
0x166e   :  { %v3026_v54 = vpop.eup %3025 }
0x166f   :  { %v1257_v25 = vadd.f32 1.0, %v3026_v54 }
0x1671   :  { %3027 = vrcp.f32 %v1257_v25 }
0x167e   :  { %v3028_v20 = vpop.eup %3027 }
0x167f   :  { %v1261_v28 = vmul.f32 %v3028_v20, %v1171_v62 }
0x1697   :  { %v971_v23 = vpop.permute.xlu0 %970 }
0x1698   :  { %2780 = vmatmul.mubr.msk.f32.gmra.mxu0 %vm161_vm2, %v971_v23 }
0x1699   :  { %2812 = vmatprep.mubr.msk.f32.mxu0 %vm3090_vm0, %v3089_v1 }
0x16df   :  { %v1264_v26 = vpop.permute.xlu1 %1263 }
0x16e0   :  { %v1266_v27 = vmul.f32 %v3028_v20, %v1264_v26 }
0x16e2   :  { %1268 = vrot.lane.b32.xlu1 %v1266_v27, %s3092_s30 }
0x1754   :  { %v1269_v29 = vpop.permute.xlu1 %1268 }
0x1755   :  { %v1271_v31 = vadd.f32 %v1269_v29, %v1261_v28 }
0x1757   :  { %3029 = vtanh.f32 %v1271_v31 }
0x1758   :  { %v3452_v43 = vpop.f32.mrf.mxu0 }
0x175a   :  { %v3454_v44 = vpop.f32.mrf.mxu0 }
0x1764   :  { %v3030_v32 = vpop.eup %3029 }
0x1765   :  { %1274 = vrot.lane.b32.xlu1 %v3030_v32, %s3091_s29 }
0x17d7   :  { %v1275_v60 = vpop.permute.xlu1 %1274 }
0x17d8   :  { %v1277_v33 = vmul.f32 %v3028_v20, %v1275_v60 }
0x17da   :  { %1279 = vrot.lane.b32.xlu1 %v1277_v33, %s3092_s30 }
0x184c   :  { %v1280_v38 = vpop.permute.xlu1 %1279 }
0x184d   :  { %2813 = vmatmul.mubr.msk.f32.vlgmr.msra.gmra.mxu0 %vm161_vm2, %v1280_v38 }
0x184e   :  { %2827 = vmatpush3.msra.mxu0 %v3349_v34  ;;  %2834 = vmatprep.mubr.msk.f32.mxu0 %vm3090_vm0, %v3089_v1 }
0x184f   :  { %2828 = vmatprep.subr.mxu0 %v3089_v1 }
0x1850   :  { %2829 = vmatpush3.msra.mxu0 %v3355_v35 }
0x1851   :  { %2830 = vmatprep.subr.mxu0 %v3089_v1 }
0x1852   :  { %2831 = vmatpush3.msra.mxu0 %v3362_v36 }
0x1853   :  { %2832 = vmatprep.subr.mxu0 %v3089_v1 }
0x1854   :  { %2833 = vmatpush3.msra.mxu0 %v3369_v37 }
0x1855   :  { %2848 = vmatprep.subr.mxu0 %v3089_v1 }
0x190d   :  { %v1349_v46 = vpop.f32.mrf.mxu0 }
0x190e   :  { %v1353_v48 = vadd.f32 %v1349_v46, %v1051_v45 }
0x190f   :  { %v2814_v49 = vpop.f32.mrf.mxu0 }
0x1910   :  { %3031 = vtanh.f32 %v1353_v48  ;;  %v2493_v51 = vmul.f32 -1.442695, %v1353_v48 }
0x1912   :  { %3033 = vpow2.f32 %v2493_v51 }
0x191d   :  { %v3032_v50 = vpop.eup %3031 }
0x191e   :  { %1363 = vrot.lane.b32.xlu0 %v3032_v50, %s3091_s29 }
0x191f   :  { %v3034_v52 = vpop.eup %3033 }
0x1920   :  { %v1357_v11 = vadd.f32 1.0, %v3034_v52 }
0x1922   :  { %3035 = vrcp.f32 %v1357_v11 }
0x192f   :  { %v3036_v59 = vpop.eup %3035 }
0x1930   :  { %v1361_v56 = vmul.f32 %v3036_v59, %v1271_v31 }
0x1990   :  { %v1364_v53 = vpop.permute.xlu0 %1363 }
0x1991   :  { %v1366_v55 = vmul.f32 %v3036_v59, %v1364_v53 }
0x1993   :  { %1368 = vrot.lane.b32.xlu1 %v1366_v55, %s3092_s30 }
0x1a05   :  { %v1369_v58 = vpop.permute.xlu1 %1368 }
0x1a06   :  { %v1371_v61 = vadd.f32 %v1369_v58, %v1361_v56  ;;  %v1071_v58 = vadd.f32 %v3405_v47, %v3454_v44 }
0x1a08   :  { %3037 = vtanh.f32 %v1371_v61 }
0x1a15   :  { %v3038_v2 = vpop.eup %3037 }
0x1a16   :  { %1374 = vrot.lane.b32.xlu0 %v3038_v2, %s3091_s29 }
0x1a88   :  { %v1375_v62 = vpop.permute.xlu0 %1374 }
0x1a89   :  { %v1377_v63 = vmul.f32 %v3036_v59, %v1375_v62 }
0x1a8b   :  { %1379 = vrot.lane.b32.xlu1 %v1377_v63, %s3092_s30 }
0x1afd   :  { %v1380_v0 = vpop.permute.xlu1 %1379 }
0x1afe   :  { %2824 = vmatmul.mubr.msk.f32.vlgmr.msra.gmra.mxu1 %vm161_vm2, %v1380_v0 }
0x1aff   :  { %2838 = vmatpush3.msra.mxu1 %v3349_v34  ;;  %2845 = vmatprep.mubr.msk.f32.mxu1 %vm3090_vm0, %v3089_v1 }
0x1b00   :  { %2839 = vmatprep.subr.mxu1 %v3089_v1 }
0x1b01   :  { %2840 = vmatpush3.msra.mxu1 %v3355_v35 }
0x1b02   :  { %2841 = vmatprep.subr.mxu1 %v3089_v1 }
0x1b03   :  { %2842 = vmatpush3.msra.mxu1 %v3362_v36 }
0x1b04   :  { %2843 = vmatprep.subr.mxu1 %v3089_v1 }
0x1b05   :  { %2844 = vmatpush3.msra.mxu1 %v3369_v37 }
0x1b06   :  { %2859 = vmatprep.subr.mxu1 %v3089_v1 }
0x1bbe   :  { %v1449_v4 = vpop.f32.mrf.mxu1 }
0x1bbf   :  { %v1453_v5 = vadd.f32 %v1449_v4, %v1056_v3 }
0x1bc0   :  { %v2825_v7 = vpop.f32.mrf.mxu1 }
0x1bc1   :  { %3039 = vtanh.f32 %v1453_v5  ;;  %v2495_v8 = vmul.f32 -1.442695, %v1453_v5 }
0x1bc3   :  { %3041 = vpow2.f32 %v2495_v8 }
0x1bce   :  { %v3040_v6 = vpop.eup %3039 }
0x1bcf   :  { %1463 = vrot.lane.b32.xlu0 %v3040_v6, %s3091_s29 }
0x1bd0   :  { %v3042_v9 = vpop.eup %3041 }
0x1bd1   :  { %v1457_v10 = vadd.f32 1.0, %v3042_v9 }
0x1bd3   :  { %3043 = vrcp.f32 %v1457_v10 }
0x1be0   :  { %v3044_v12 = vpop.eup %3043 }
0x1be1   :  { %v1461_v14 = vmul.f32 %v3044_v12, %v1371_v61 }
0x1c41   :  { %v1464_v57 = vpop.permute.xlu0 %1463 }
0x1c42   :  { %v1466_v13 = vmul.f32 %v3044_v12, %v1464_v57 }
0x1c44   :  { %1468 = vrot.lane.b32.xlu1 %v1466_v13, %s3092_s30 }
0x1cb6   :  { %v1469_v15 = vpop.permute.xlu1 %1468 }
0x1cb7   :  { %v1471_v16 = vadd.f32 %v1469_v15, %v1461_v14  ;;  %v1076_v14 = vadd.f32 %v3452_v43, %v3405_v47  ;;  %v1881_v43 = vld [vmem:[%s3693_s1 + $0x98] sm:$0xff] }
0x1cb9   :  { %3045 = vtanh.f32 %v1471_v16 }
0x1cc6   :  { %v3046_v17 = vpop.eup %3045 }
0x1cc7   :  { %1474 = vrot.lane.b32.xlu0 %v3046_v17, %s3091_s29 }
0x1d39   :  { %v1475_v18 = vpop.permute.xlu0 %1474 }
0x1d3a   :  { %v1477_v19 = vmul.f32 %v3044_v12, %v1475_v18 }
0x1d3c   :  { %1479 = vrot.lane.b32.xlu1 %v1477_v19, %s3092_s30 }
0x1dae   :  { %v1480_v21 = vpop.permute.xlu1 %1479 }
0x1daf   :  { %2835 = vmatmul.mubr.msk.f32.vlgmr.msra.gmra.mxu0 %vm161_vm2, %v1480_v21 }
0x1db0   :  { %2849 = vmatpush3.msra.mxu0 %v3349_v34  ;;  %2856 = vmatprep.mubr.msk.f32.mxu0 %vm3090_vm0, %v3089_v1 }
0x1db1   :  { %2850 = vmatprep.subr.mxu0 %v3089_v1 }
0x1db2   :  { %2851 = vmatpush3.msra.mxu0 %v3355_v35 }
0x1db3   :  { %2852 = vmatprep.subr.mxu0 %v3089_v1 }
0x1db4   :  { %2853 = vmatpush3.msra.mxu0 %v3362_v36 }
0x1db5   :  { %2854 = vmatprep.subr.mxu0 %v3089_v1 }
0x1db6   :  { %2855 = vmatpush3.msra.mxu0 %v3369_v37 }
0x1db7   :  { %2870 = vmatprep.subr.mxu0 %v3089_v1 }
0x1e6f   :  { %v1549_v22 = vpop.f32.mrf.mxu0 }
0x1e70   :  { %v1553_v23 = vadd.f32 %v1549_v22, %v1061_v30 }
0x1e71   :  { %v2836_v24 = vpop.f32.mrf.mxu0 }
0x1e72   :  { %3047 = vtanh.f32 %v1553_v23  ;;  %v2497_v25 = vmul.f32 -1.442695, %v1553_v23 }
0x1e74   :  { %3049 = vpow2.f32 %v2497_v25 }
0x1e7f   :  { %v3048_v54 = vpop.eup %3047 }
0x1e80   :  { %1563 = vrot.lane.b32.xlu0 %v3048_v54, %s3091_s29 }
0x1e81   :  { %v3050_v20 = vpop.eup %3049 }
0x1e82   :  { %v1557_v26 = vadd.f32 1.0, %v3050_v20  ;;  %v1880_v20 = vld [vmem:[%s3693_s1 + $0x90] sm:$0xff] }
0x1e84   :  { %3051 = vrcp.f32 %v1557_v26  ;;  %v1879_v26 = vld [vmem:[%s3693_s1 + $0x88] sm:$0xff] }
0x1e91   :  { %v3052_v27 = vpop.eup %3051 }
0x1e92   :  { %v1561_v31 = vmul.f32 %v3052_v27, %v1471_v16 }
0x1ef2   :  { %v1564_v28 = vpop.permute.xlu0 %1563 }
0x1ef3   :  { %v1566_v29 = vmul.f32 %v3052_v27, %v1564_v28 }
0x1ef5   :  { %1568 = vrot.lane.b32.xlu1 %v1566_v29, %s3092_s30  ;;  %v1972_v29 = vld [vmem:[%s3693_s1 + $0xe0] sm:$0xff] }
0x1f67   :  { %v1569_v32 = vpop.permute.xlu1 %1568 }
0x1f68   :  { %v1571_v60 = vadd.f32 %v1569_v32, %v1561_v31  ;;  %v1971_v31 = vld [vmem:[%s3693_s1 + $0xd8] sm:$0xff]  ;;  %v1970_v32 = vld [vmem:[%s3693_s1 + $0xd0] sm:$0xff] }
0x1f6a   :  { %3053 = vtanh.f32 %v1571_v60 }
0x1f77   :  { %v3054_v33 = vpop.eup %3053 }
0x1f78   :  { %1574 = vrot.lane.b32.xlu0 %v3054_v33, %s3091_s29  ;;  %v1968_v33 = vld [vmem:[%s3693_s1 + $0xc0] sm:$0xff] }
0x1fea   :  { %v1575_v38 = vpop.permute.xlu0 %1574 }
0x1feb   :  { %v1577_v39 = vmul.f32 %v3052_v27, %v1575_v38  ;;  %v1878_v27 = vld [vmem:[%s3693_s1 + $0x80] sm:$0xff] }
0x1fed   :  { %1579 = vrot.lane.b32.xlu1 %v1577_v39, %s3092_s30 }
0x205f   :  { %v1580_v40 = vpop.permute.xlu1 %1579 }
0x2060   :  { %2846 = vmatmul.mubr.msk.f32.vlgmr.msra.gmra.mxu1 %vm161_vm2, %v1580_v40 }
0x2061   :  { %2860 = vmatpush3.msra.mxu1 %v3349_v34  ;;  %2867 = vmatprep.mubr.msk.f32.mxu1 %vm3090_vm0, %v3089_v1  ;;  %v1066_v34 = vadd.f32 %v3448_v41, %v3405_v47 }
0x2062   :  { %2861 = vmatprep.subr.mxu1 %v3089_v1 }
0x2063   :  { %2862 = vmatpush3.msra.mxu1 %v3355_v35 }
0x2064   :  { %2863 = vmatprep.subr.mxu1 %v3089_v1 }
0x2065   :  { %2864 = vmatpush3.msra.mxu1 %v3362_v36 }
0x2066   :  { %2865 = vmatprep.subr.mxu1 %v3089_v1 }
0x2067   :  { %2866 = vmatpush3.msra.mxu1 %v3369_v37 }
0x2068   :  { %2881 = vmatprep.subr.mxu1 %v3089_v1 }
0x2120   :  { %v1649_v42 = vpop.f32.mrf.mxu1 }
0x2121   :  { %v1653_v45 = vadd.f32 %v1649_v42, %v1066_v34  ;;  %v1967_v34 = vld [vmem:[%s3693_s1 + $0xb8] sm:$0xff]  ;;  %v1966_v42 = vld [vmem:[%s3693_s1 + $0xb0] sm:$0xff] }
0x2122   :  { %v2847_v46 = vpop.f32.mrf.mxu1 }
0x2123   :  { %3055 = vtanh.f32 %v1653_v45  ;;  %v2499_v35 = vmul.f32 -1.442695, %v1653_v45  ;;  %v1965_v45 = vld [vmem:[%s3693_s1 + $0xa8] sm:$0xff]  ;;  %v2058_v46 = vld [vmem:[%s3693_s1 + $0x140] sm:$0xff] }
0x2125   :  { %3057 = vpow2.f32 %v2499_v35 }
0x2130   :  { %v3056_v48 = vpop.eup %3055 }
0x2131   :  { %1663 = vrot.lane.b32.xlu0 %v3056_v48, %s3091_s29  ;;  %v2504_v48 = vld [vmem:[%s3693_s1 + $0x7a] ss:$0 sm:$0xff] }
0x2132   :  { %v3058_v49 = vpop.eup %3057 }
0x2133   :  { %v1657_v36 = vadd.f32 1.0, %v3058_v49 }
0x2135   :  { %3059 = vrcp.f32 %v1657_v36 }
0x2142   :  { %v3060_v50 = vpop.eup %3059 }
0x2143   :  { %v1661_v52 = vmul.f32 %v3060_v50, %v1571_v60  ;;  %v1969_v60 = vld [vmem:[%s3693_s1 + $0xc8] sm:$0xff] }
0x21a3   :  { %v1664_v51 = vpop.permute.xlu0 %1663 }
0x21a4   :  { %v1666_v37 = vmul.f32 %v3060_v50, %v1664_v51 }
0x21a6   :  { %1668 = vrot.lane.b32.xlu1 %v1666_v37, %s3092_s30  ;;  %v2057_v37 = vld [vmem:[%s3693_s1 + $0x138] sm:$0xff] }
0x2218   :  { %v1669_v11 = vpop.permute.xlu1 %1668 }
0x2219   :  { %v1671_v41 = vadd.f32 %v1669_v11, %v1661_v52  ;;  %v2056_v52 = vld [vmem:[%s3693_s1 + $0x130] sm:$0xff]  ;;  %v2055_v11 = vld [vmem:[%s3693_s1 + $0x128] sm:$0xff] }
0x221b   :  { %3061 = vtanh.f32 %v1671_v41 }
0x2228   :  { %v3062_v59 = vpop.eup %3061 }
0x2229   :  { %1674 = vrot.lane.b32.xlu0 %v3062_v59, %s3091_s29 }
0x229b   :  { %v1675_v53 = vpop.permute.xlu0 %1674 }
0x229c   :  { %v1677_v55 = vmul.f32 %v3060_v50, %v1675_v53 }
0x229e   :  { %1679 = vrot.lane.b32.xlu1 %v1677_v55, %s3092_s30 }
0x2310   :  { %v1680_v56 = vpop.permute.xlu1 %1679 }
0x2311   :  { %2857 = vmatmul.mubr.msk.f32.vlgmr.msra.gmra.mxu0 %vm161_vm2, %v1680_v56 }
0x2312   :  { %2878 = vmatprep.mubr.msk.f32.mxu0 %vm3090_vm0, %v3089_v1  ;;  %2871 = vmatpush3.msra.mxu0 %v1881_v43  ;;  %v2258_v43 = vld [vmem:[%s3693_s1 + $0xf0] sm:$0xff] }
0x2313   :  { %2872 = vmatprep.subr.mxu0 %v3089_v1 }
0x2314   :  { %2873 = vmatpush3.msra.mxu0 %v1880_v20  ;;  %v2257_v20 = vld [vmem:[%s3693_s1 + $0xe8] sm:$0xff] }
0x2315   :  { %2874 = vmatprep.subr.mxu0 %v3089_v1 }
0x2316   :  { %2875 = vmatpush3.msra.mxu0 %v1879_v26 }
0x2317   :  { %2876 = vmatprep.subr.mxu0 %v3089_v1 }
0x2318   :  { %2877 = vmatpush3.msra.mxu0 %v1878_v27 }
0x2319   :  { %2900 = vmatprep.subr.mxu0 %v3089_v1 }
0x23d1   :  { %v1749_v61 = vpop.f32.mrf.mxu0 }
0x23d2   :  { %v1753_v2 = vadd.f32 %v1749_v61, %v1071_v58  ;;  %v2508_v61 = vld [vmem:[%s3693_s1 + $0x7d] ss:$0 sm:$0xff] }
0x23d3   :  { %v2858_v62 = vpop.f32.mrf.mxu0 }
0x23d4   :  { %3063 = vtanh.f32 %v1753_v2  ;;  %v2501_v0 = vmul.f32 -1.442695, %v1753_v2 }
0x23d6   :  { %3065 = vpow2.f32 %v2501_v0 }
0x23e1   :  { %v3064_v63 = vpop.eup %3063 }
0x23e2   :  { %1763 = vrot.lane.b32.xlu0 %v3064_v63, %s3091_s29 }
0x23e3   :  { %v3066_v3 = vpop.eup %3065 }
0x23e4   :  { %v1757_v4 = vadd.f32 1.0, %v3066_v3  ;;  %v2149_v3 = vlaneseq }
0x23e6   :  { %3067 = vrcp.f32 %v1757_v4  ;;  %v2150_v4 = vand.u32 127, %v2149_v3 }
0x23f3   :  { %v3068_v5 = vpop.eup %3067 }
0x23f4   :  { %v1761_v8 = vmul.f32 %v3068_v5, %v1671_v41  ;;  %v2506_v41 = vld [vmem:[%s3693_s1 + $0x7b] ss:$0 sm:$0xff] }
0x2454   :  { %v1764_v7 = vpop.permute.xlu0 %1763 }
0x2455   :  { %v1766_v6 = vmul.f32 %v3068_v5, %v1764_v7 }
0x2457   :  { %1768 = vrot.lane.b32.xlu1 %v1766_v6, %s3092_s30 }
0x24c9   :  { %v1769_v9 = vpop.permute.xlu1 %1768 }
0x24ca   :  { %v1771_v44 = vadd.f32 %v1769_v9, %v1761_v8 }
0x24cc   :  { %3069 = vtanh.f32 %v1771_v44 }
0x24d9   :  { %v3070_v10 = vpop.eup %3069 }
0x24da   :  { %1774 = vrot.lane.b32.xlu0 %v3070_v10, %s3091_s29 }
0x254c   :  { %v1775_v12 = vpop.permute.xlu0 %1774 }
0x254d   :  { %v1777_v57 = vmul.f32 %v3068_v5, %v1775_v12 }
0x254f   :  { %1779 = vrot.lane.b32.xlu1 %v1777_v57, %s3092_s30 }
0x25c1   :  { %v1780_v13 = vpop.permute.xlu1 %1779 }
0x25c2   :  { %2868 = vmatmul.mubr.msk.f32.vlgmr.msra.gmra.mxu1 %vm161_vm2, %v1780_v13  ;;  %v2171_v13 = vld [vmem:[%s3693_s1 + $0xa0] sm:$0x3] }
0x25c3   :  { %2897 = vmatprep.mubr.msk.f32.mxu1 %vm3090_vm0, %v3089_v1  ;;  %2882 = vmatpush3.msra.mxu1 %v1972_v29 }
0x25c4   :  { %2883 = vmatprep.subr.mxu1 %v3089_v1 }
0x25c5   :  { %2884 = vmatpush3.msra.mxu1 %v1971_v31 }
0x25c6   :  { %2885 = vmatprep.subr.mxu1 %v3089_v1 }
0x25c7   :  { %2886 = vmatpush3.msra.mxu1 %v1970_v32 }
0x25c8   :  { %2887 = vmatprep.subr.mxu1 %v3089_v1 }
0x25c9   :  { %2888 = vmatpush3.msra.mxu1 %v1969_v60 }
0x25ca   :  { %2889 = vmatprep.subr.mxu1 %v3089_v1 }
0x25cb   :  { %2890 = vmatpush3.msra.mxu1 %v1968_v33 }
0x25cc   :  { %2891 = vmatprep.subr.mxu1 %v3089_v1 }
0x25cd   :  { %2892 = vmatpush3.msra.mxu1 %v1967_v34  ;;  %v2349_v34 = vld [vmem:[%s3693_s1 + $0x150] sm:$0xff] }
0x25ce   :  { %2893 = vmatprep.subr.mxu1 %v3089_v1 }
0x25cf   :  { %2894 = vmatpush3.msra.mxu1 %v1966_v42  ;;  %v2348_v42 = vld [vmem:[%s3693_s1 + $0x148] sm:$0xff] }
0x25d0   :  { %2895 = vmatprep.subr.mxu1 %v3089_v1 }
0x25d1   :  { %2896 = vmatpush3.msra.mxu1 %v1965_v45  ;;  %v2513_v45 = vld [vmem:[%s3693_s1 + $0x7c] ss:$0 sm:$0xff] }
0x25d2   :  { %2916 = vmatprep.subr.mxu1 %v3089_v1 }
0x2682   :  { %v1849_v15 = vpop.f32.mrf.mxu1 }
0x2683   :  { %v1853_v16 = vadd.f32 %v1849_v15, %v1076_v14 }
0x2684   :  { %v2869_v17 = vpop.f32.mrf.mxu1 }
0x2685   :  { %3071 = vtanh.f32 %v1853_v16  ;;  %v2503_v19 = vmul.f32 -1.442695, %v1853_v16 }
0x2687   :  { %3073 = vpow2.f32 %v2503_v19 }
0x2692   :  { %v3072_v18 = vpop.eup %3071 }
0x2693   :  { %1863 = vrot.lane.b32.xlu0 %v3072_v18, %s3091_s29 }
0x2694   :  { %v3074_v21 = vpop.eup %3073 }
0x2695   :  { %v1857_v30 = vadd.f32 1.0, %v3074_v21 }
0x2697   :  { %3075 = vrcp.f32 %v1857_v30 }
0x26a4   :  { %v3076_v22 = vpop.eup %3075 }
0x26a5   :  { %v1861_v54 = vmul.f32 %v3076_v22, %v1771_v44 }
0x2705   :  { %v1864_v23 = vpop.permute.xlu0 %1863 }
0x2706   :  { %v1866_v24 = vmul.f32 %v3076_v22, %v1864_v23  ;;  %v2263_v23 = vld [vmem:[%s3693_s1 + $0x118] sm:$0xff] }
0x2708   :  { %1868 = vrot.lane.b32.xlu1 %v1866_v24, %s3092_s30  ;;  %v2262_v24 = vld [vmem:[%s3693_s1 + $0x110] sm:$0xff] }
0x277a   :  { %v1869_v25 = vpop.permute.xlu1 %1868 }
0x277b   :  { %v1871_v47 = vadd.f32 %v1869_v25, %v1861_v54  ;;  %v2261_v54 = vld [vmem:[%s3693_s1 + $0x108] sm:$0xff]  ;;  %v2260_v25 = vld [vmem:[%s3693_s1 + $0x100] sm:$0xff] }
0x277d   :  { %3077 = vtanh.f32 %v1871_v47  ;;  %v2259_v47 = vld [vmem:[%s3693_s1 + $0xf8] sm:$0xff] }
0x278a   :  { %v3078_v28 = vpop.eup %3077 }
0x278b   :  { %1874 = vrot.lane.b32.xlu0 %v3078_v28, %s3091_s29 }
0x27fd   :  { %v1875_v38 = vpop.permute.xlu0 %1874 }
0x27fe   :  { %v1877_v39 = vmul.f32 %v3076_v22, %v1875_v38  ;;  %v2264_v22 = vld [vmem:[%s3693_s1 + $0x120] sm:$0xff] }
0x27ff   :  { %v2351_v38 = vld [vmem:[%s3693_s1 + $0x160] sm:$0xff] }
0x2800   :  { %1888 = vrot.lane.b32.xlu1 %v1877_v39, %s3092_s30 }
0x2872   :  { %v1889_v40 = vpop.permute.xlu1 %1888 }
0x2873   :  { %2879 = vmatmul.mubr.msk.f32.vlgmr.msra.gmra.mxu0 %vm161_vm2, %v1889_v40  ;;  %v2350_v40 = vld [vmem:[%s3693_s1 + $0x158] sm:$0xff] }
0x2874   :  { %2908 = vmatprep.mubr.msk.f32.mxu0 %vm3090_vm0, %v3089_v1  ;;  %2901 = vmatpush3.msra.mxu0 %v2058_v46 }
0x2875   :  { %2902 = vmatprep.subr.mxu0 %v3089_v1 }
0x2876   :  { %2903 = vmatpush3.msra.mxu0 %v2057_v37 }
0x2877   :  { %2904 = vmatprep.subr.mxu0 %v3089_v1 }
0x2878   :  { %2905 = vmatpush3.msra.mxu0 %v2056_v52 }
0x2879   :  { %2906 = vmatprep.subr.mxu0 %v3089_v1 }
0x287a   :  { %2907 = vmatpush3.msra.mxu0 %v2055_v11 }
0x287b   :  { %2911 = vmatprep.subr.mxu0 %v3089_v1 }
0x2933   :  { %v1958_v35 = vpop.f32.mrf.mxu0 }
0x2934   :  { %v3587_v49 = vadd.f32 %v2504_v48, %v1958_v35 }
0x2935   :  { %v2880_v36 = vpop.f32.mrf.mxu0 }
0x2936   :  { %v1963_v50 = vmul.f32 0.01, %v3587_v49  ;;  %vm1962_vm3 = vcmp.ge.f32.partialorder %v3587_v49, 0.0 }
0x2938   :  { %v1964_v51 = vsel %vm1962_vm3, %v3587_v49, %v1963_v50 }
0x2939   :  { %2898 = vmatmul.mubr.msk.f32.vlgmr.msra.gmra.mxu1 %vm1978_vm4, %v1964_v51 }
0x293a   :  { %2932 = vmatprep.mubr.msk.f32.mxu1 %vm3090_vm0, %v3089_v1  ;;  %2917 = vmatpush3.msra.mxu1 %v2264_v22 }
0x293b   :  { %2918 = vmatprep.subr.mxu1 %v3089_v1 }
0x293c   :  { %2919 = vmatpush3.msra.mxu1 %v2263_v23 }
0x293d   :  { %2920 = vmatprep.subr.mxu1 %v3089_v1 }
0x293e   :  { %2921 = vmatpush3.msra.mxu1 %v2262_v24 }
0x293f   :  { %2922 = vmatprep.subr.mxu1 %v3089_v1 }
0x2940   :  { %2923 = vmatpush3.msra.mxu1 %v2261_v54 }
0x2941   :  { %2924 = vmatprep.subr.mxu1 %v3089_v1 }
0x2942   :  { %2925 = vmatpush3.msra.mxu1 %v2260_v25 }
0x2943   :  { %2926 = vmatprep.subr.mxu1 %v3089_v1 }
0x2944   :  { %2927 = vmatpush3.msra.mxu1 %v2259_v47 }
0x2945   :  { %2928 = vmatprep.subr.mxu1 %v3089_v1 }
0x2946   :  { %2929 = vmatpush3.msra.mxu1 %v2258_v43 }
0x2947   :  { %2930 = vmatprep.subr.mxu1 %v3089_v1 }
0x2948   :  { %2931 = vmatpush3.msra.mxu1 %v2257_v20 }
0x29f9   :  { %v2048_v59 = vpop.f32.mrf.mxu1 }
0x29fa   :  { %v2049_v53 = vadd.f32 %v2506_v41, %v2048_v59 }
0x29fb   :  { %v2899_v55 = vpop.f32.mrf.mxu1 }
0x29fc   :  { %vm2052_vm5 = vcmp.ge.f32.partialorder %v2049_v53, 0.0  ;;  %v2053_v56 = vmul.f32 0.01, %v2049_v53 }
0x29fe   :  { %v2054_v58 = vsel %vm2052_vm5, %v2049_v53, %v2053_v56 }
0x29ff   :  { %2909 = vmatmul.mubr.msk.f32.vlgmr.msra.gmra.mxu0 %vm161_vm2, %v2054_v58 }
0x2a00   :  { %2913 = vmatprep.mubr.msk.f32.mxu0 %vm3090_vm0, %v3089_v1  ;;  %2912 = vmatpush3.msk.msra.mxu0 %vm2175_vm9, %v2171_v13 }
0x2a01   :  { %2935 = vmatprep.subr.mxu0 %v3089_v1 }
0x2abf   :  { %v2133_v2 = vpop.f32.mrf.mxu0 }
0x2ac0   :  { %v3616_v62 = vadd.f32 %v2508_v61, %v2133_v2 }
0x2ac1   :  { %v2910_v63 = vpop.f32.mrf.mxu0 }
0x2ac2   :  { %v2138_v0 = vsel %vm2137_vm6, %v3616_v62, -inf }
0x2ac3   :  { %2139 = vmax.xlane.f32.xlu0 %v2138_v0 }
0x2b4c   :  { %v2140_v5 = vpop.xlane.xlu0 %2139 }
0x2b4d   :  { %vm2151_vm7 = vcmp.ge.f32.partialorder %v3616_v62, %v2140_v5  ;;  %v2141_v31 = vsub.f32 %v3616_v62, %v2140_v5 }
0x2b4e   :  { %v2152_v7 = vsel %vm2151_vm7, %v2150_v4, 2 }
0x2b4f   :  { %v2153_v6 = vsel %vm2137_vm6, %v2152_v7, 2147483647  ;;  %v2142_v32 = vmul.f32 1.442695, %v2141_v31 }
0x2b50   :  { %v2155_v8 = vshra.s32 %v2153_v6, 16  ;;  %v2154_v44 = vand.u32 65535, %v2153_v6 }
0x2b51   :  { %3079 = vpow2.f32 %v2142_v32 }
0x2b52   :  { %v2157_v9 = vcvt.s32.f32 %v2155_v8  ;;  %v2156_v12 = vcvt.s32.f32 %v2154_v44 }
0x2b54   :  { %2158 = vmin.xlane.f32.xlu1 %v2157_v9 }
0x2b5e   :  { %v3080_v60 = vpop.eup %3079 }
0x2b5f   :  { %v2144_v33 = vsel %vm2137_vm6, %v3080_v60, 0.0 }
0x2bdd   :  { %v2159_v10 = vpop.xlane.xlu1 %2158 }
0x2bde   :  { %vm2160_vm8 = vcmp.eq.f32.partialorder %v2157_v9, %v2159_v10  ;;  %v2165_v14 = vcvt.f32.s32 %v2159_v10 }
0x2bdf   :  { %v2161_v57 = vsel %vm2160_vm8, %v2156_v12, inf }
0x2be0   :  { %2162 = vmin.xlane.f32.xlu0 %v2161_v57  ;;  %v2166_v16 = vshll.u32 %v2165_v14, 16 }
0x2c69   :  { %v2163_v15 = vpop.xlane.xlu0 %2162 }
0x2c6a   :  { %v2164_v17 = vcvt.f32.s32 %v2163_v15 }
0x2c6c   :  { %v2167_v18 = vadd.s32 %v2166_v16, %v2164_v17 }
0x2c6e   :  { %vm2168_vm10 = vcmp.eq.s32.totalorder %v2150_v4, %v2167_v18 }
0x2c6f   :  { %v2510_v19 = vsel %vm2168_vm10, 1.0, %v3089_v1 }
0x2c70   :  { %2914 = vmatmul.mubr.msk.f32.vlgmr.msra.gmra.mxu0 %vm2137_vm6, %v2510_v19 }
0x2c71   :  { %2943 = vmatprep.mubr.msk.f32.mxu0 %vm3090_vm0, %v3089_v1  ;;  %2936 = vmatpush3.msra.mxu0 %v2351_v38 }
0x2c72   :  { %2937 = vmatprep.subr.mxu0 %v3089_v1 }
0x2c73   :  { %2938 = vmatpush3.msra.mxu0 %v2350_v40 }
0x2c74   :  { %2939 = vmatprep.subr.mxu0 %v3089_v1 }
0x2c75   :  { %2940 = vmatpush3.msra.mxu0 %v2349_v34 }
0x2c76   :  { %2941 = vmatprep.subr.mxu0 %v3089_v1  ;;  %v2515_v1 = vld [vmem:[%s3693_s1 + $0x7e] ss:$0 sm:$0xff] }
0x2c77   :  { %2942 = vmatpush3.msra.mxu0 %v2348_v42 }
0x2d30   :  { %v2245_v21 = vpop.f32.mrf.mxu0 }
0x2d31   :  { %2250 = vrot.lane.b32.xlu0 %v2245_v21, %s3091_s29 }
0x2d32   :  { %v2915_v30 = vpop.f32.mrf.mxu0 }
0x2da3   :  { %v2251_v26 = vpop.permute.xlu0 %2250 }
0x2da4   :  { %v2253_v27 = vadd.f32 %v2251_v26, %v3587_v49 }
0x2da6   :  { %v2255_v28 = vmul.f32 0.01, %v2253_v27  ;;  %vm2254_vm11 = vcmp.ge.f32.partialorder %v2253_v27, 0.0 }
0x2da8   :  { %v2256_v29 = vsel %vm2254_vm11, %v2253_v27, %v2255_v28 }
0x2da9   :  { %2271 = vrot.lane.b32.xlu1 %v2256_v29, %s3091_s29 }
0x2dcd   :  { %2145 = vadd.xlane.f32.xlu1 %v2144_v33 }
0x2e1b   :  { %v2272_v39 = vpop.permute.xlu1 %2271 }
0x2e1c   :  { %2933 = vmatmul.mubr.msk.f32.vlgmr.msra.gmra.mxu1 %vm1978_vm4, %v2272_v39 }
0x2e56   :  { %v2146_v56 = vpop.xlane.xlu1 %2145 }
0x2edc   :  { %v2341_v46 = vpop.f32.mrf.mxu1 }
0x2edd   :  { %v2342_v48 = vadd.f32 %v2513_v45, %v2341_v46 }
0x2ede   :  { %v2934_v35 = vpop.f32.mrf.mxu1 }
0x2edf   :  { %vm2345_vm12 = vcmp.ge.f32.partialorder %v2342_v48, 0.0  ;;  %v2346_v49 = vmul.f32 0.01, %v2342_v48 }
0x2ee1   :  { %v2347_v36 = vsel %vm2345_vm12, %v2342_v48, %v2346_v49 }
0x2ee2   :  { %2944 = vmatmul.mubr.msk.f32.vlgmr.msra.gmra.mxu0 %vm161_vm2, %v2347_v36 }
0x2fa2   :  { %v2426_v50 = vpop.f32.mrf.mxu0 }
0x2fa3   :  { %v2427_v51 = vadd.f32 %v2515_v1, %v2426_v50 }
0x2fa4   :  { %v2945_v37 = vpop.f32.mrf.mxu0 }
0x2fa5   :  { %v2517_v52 = vmul.f32 -1.442695, %v2427_v51  ;;  %v2436_v59 = vmul.f32 1.442695, %v2427_v51 }
0x2fa7   :  { %3081 = vpow2.f32 %v2517_v52 }
0x2fb4   :  { %v3082_v11 = vpop.eup %3081 }
0x2fb5   :  { %v2433_v41 = vadd.f32 1.0, %v3082_v11 }
0x2fb7   :  { %3083 = vrcp.f32 %v2433_v41 }
0x2fb8   :  { %3085 = vpow2.f32 %v2436_v59 }
0x2fb9   :  { %3087 = vrcp.f32 %v2146_v56 }
0x2fc4   :  { %v3084_v53 = vpop.eup %3083 }
0x2fc5   :  { %2439 = vrot.lane.b32.xlu0 %v3084_v53, %s3093_s16  ;;  %v3086_v55 = vpop.eup %3085 }
0x2fc6   :  { %v3088_v58 = vpop.eup %3087 }
0x2fc7   :  { %v2148_v2 = vmul.f32 %v3088_v58, %v3080_v60 }
0x2fc9   :  { %2443 = vrot.lane.b32.xlu0 %v3086_v55, %s3093_s16 }
0x3037   :  { %v2440_v61 = vpop.permute.xlu0 %2439 }
0x3038   :  { %v2446_v62 = vsel %vm2137_vm6, %v2148_v2, %v2440_v61 }
0x303b   :  { %v2444_v63 = vpop.permute.xlu0 %2443 }
0x303c   :  { %v2448_v0 = vsel %vm2447_vm13, %v2446_v62, %v2444_v63 }
0x303d   :  { %v2450_v3 = vsel %vm2449_vm14, %v2448_v0, 0.0 }
0x303e   :  { %2451 = vst [vmem:[%s3695_s2] sm:$0xff] %v2450_v3 }

</bundles_post_ra>
